<compile_context>
chip_gen: v7x
topology: tpu7x:2x2x1
jax: 0.10.0
libtpu: 0.0.40
codegen_flags: <defaults>
</compile_context>

<pallas_src>
import numpy as np
import jax
import jax.numpy as jnp
from jax.experimental import pallas as pl
from jax.experimental.pallas import tpu as pltpu


# ---------------------------------------------------------------------------
# Kernels
# ---------------------------------------------------------------------------

def _gcn_fused_kernel(adj_ref, zT_ref, b1_ref, w2T_ref, b2_ref, out_ref):
    """Small-graph path: all operands resident in VMEM, Â streamed once.

    adj_ref holds M = Â^T (== Â for the symmetric default), so
      h^T   = z^T @ M       (layer-1 aggregation)
      out^T = s^T @ M       (layer-2 aggregation)
    """
    hT = jnp.dot(zT_ref[...], adj_ref[...],
                 preferred_element_type=jnp.float32)               # [H, Np]
    hT = jnp.maximum(hT + b1_ref[...], 0.0)
    sT = jnp.dot(w2T_ref[...], hT.astype(w2T_ref.dtype),
                 preferred_element_type=jnp.float32)               # [1, Np]
    out_ref[...] = jnp.dot(sT.astype(adj_ref.dtype), adj_ref[...],
                           preferred_element_type=jnp.float32) + b2_ref[...]


def _gcn_layer1_kernel(adj_ref, zT_ref, b1_ref, w2T_ref, sT_ref, acc_ref):
    """Grid step (i, k):
         acc[H, TM] += z^T-block[k] @ M[k-tile, i-tile]
       last k:
         acc = relu(acc + b1)  (in place);  s^T[1, TM] = W2^T @ acc
    """
    k = pl.program_id(1)

    @pl.when(k == 0)
    def _():
        acc_ref[...] = jnp.zeros_like(acc_ref)

    acc_ref[...] += jnp.dot(zT_ref[k], adj_ref[...],
                            preferred_element_type=jnp.float32)    # [H, TM]

    @pl.when(k == pl.num_programs(1) - 1)
    def _():
        acc_ref[...] = jnp.maximum(acc_ref[...] + b1_ref[...], 0.0)
        sT_ref[...] = jnp.dot(w2T_ref[...], acc_ref[...].astype(w2T_ref.dtype),
                              preferred_element_type=jnp.float32)  # [1, TM]


def _gcn_layer2_kernel(adj_ref, sT_ref, b2_ref, out_ref):
    """out^T[1, i-tile] = s^T @ M[:, i-tile] + b2  (full reduction, no k loop)."""
    out_ref[...] = jnp.dot(sT_ref[...], adj_ref[...],
                           preferred_element_type=jnp.float32) + b2_ref[...]


# ---------------------------------------------------------------------------
# Wrapper
# ---------------------------------------------------------------------------

def _pick_tile(np_dim, cap):
    """Largest multiple of 128 that divides np_dim and is <= cap."""
    m_total = np_dim // 128
    best, m = 128, 1
    while 128 * m <= cap and m <= m_total:
        if m_total % m == 0:
            best = 128 * m
        m += 1
    return best


def _vmem_limit(nbytes):
    # Valid on every generation (v7x physical VMEM = 64 MiB / TensorCore).
    return int(min(64 * 2**20, max(32 * 2**20, int(nbytes * 1.25))))


def learnable_selection_gcn_forward(x, adj_hat, w1, b1, w2, b2, *,
                                    tm=None, tk=None,
                                    mxu_dtype=jnp.bfloat16,
                                    assume_symmetric=True,
                                    fuse_vmem_budget=24 * 2**20):
    """Two-layer GCN forward on a dense, normalized adjacency Â.

    x: [N, in_dim]; adj_hat: [N, N]; w1: [in_dim, H]; b1: [H]; w2: [H, 1]; b2: [1].
    Returns [N]  (torch `.squeeze()` of the [N, 1] conv2 output).

    HBM-bound on streaming Â (AI ~= H flop/byte): Â is stored/streamed as
    `mxu_dtype` (bf16 default) with f32 accumulation.  If Â plus the resident
    z^T/h^T fit under `fuse_vmem_budget`, both layers run in ONE pallas_call
    and Â is streamed exactly once; otherwise a tiled two-pass schedule runs.
    `tm`/`tk` are caps for the row / reduction tiles (defaults 1024 / 512);
    actual tiles are the largest 128-multiples dividing the padded N.  For v7x
    megacore sharding keep padded N >= 2*tm.  Set mxu_dtype=jnp.float32 for
    closer-to-f32 parity (2x Â traffic); set assume_symmetric=False if the
    adjacency is not exactly symmetric.
    """
    N, in_dim = x.shape
    H = w1.shape[1]
    assert adj_hat.shape == (N, N)

    Np = pl.cdiv(N, 128) * 128
    ab = np.dtype(mxu_dtype).itemsize

    # Kernels consume M = Â^T (aggregation as right-multiplication of
    # feature-major [*, N] operands).  For the symmetric default M == Â.
    M = adj_hat if assume_symmetric else adj_hat.T
    # Pad AFTER casting: never materializes a padded f32 copy of Â in HBM.
    adj_p = jnp.pad(jnp.asarray(M).astype(mxu_dtype),
                    ((0, Np - N), (0, Np - N)))

    # Hoisted input transform: z = x @ W1 computed once in plain XLA (tiny
    # contraction over in_dim), padded + cast once, VMEM-resident below.
    z = jnp.dot(jnp.asarray(x, jnp.float32), jnp.asarray(w1, jnp.float32))
    z_p = jnp.pad(z.astype(mxu_dtype), ((0, Np - N), (0, 0)))        # [Np, H]

    b1c = jnp.asarray(b1, jnp.float32).reshape(H, 1)                 # [H, 1]
    w2T = jnp.asarray(w2, jnp.float32).T.astype(mxu_dtype)           # [1, H]
    b2m = jnp.asarray(b2, jnp.float32).reshape(1, 1)                 # [1, 1]

    # ---------------- fused single-pass path (Â resident, streamed once) ----
    est_fused = (2 * Np * Np * ab + 2 * H * Np * ab + 2 * H * Np * 4
                 + 4 * Np * 4 + (1 << 20))
    if est_fused <= fuse_vmem_budget:
        zT = z_p.T                                                   # [H, Np]
        cost = pl.CostEstimate(
            flops=int(2 * H * Np * Np + 2 * H * Np + 2 * Np * Np),
            transcendentals=0,
            bytes_accessed=int(Np * Np * ab + H * Np * ab + Np * 4))
        outT = pl.pallas_call(
            _gcn_fused_kernel,
            out_shape=jax.ShapeDtypeStruct((1, Np), jnp.float32),
            grid=(1,),
            in_specs=[
                pl.BlockSpec((Np, Np), lambda i: (0, 0)),     # M = Â^T
                pl.BlockSpec((H, Np), lambda i: (0, 0)),      # z^T (resident)
                pl.BlockSpec((H, 1), lambda i: (0, 0)),       # b1
                pl.BlockSpec((1, H), lambda i: (0, 0)),       # W2^T
                pl.BlockSpec((1, 1), lambda i: (0, 0)),       # b2
            ],
            out_specs=pl.BlockSpec((1, Np), lambda i: (0, 0)),
            compiler_params=pltpu.CompilerParams(
                dimension_semantics=("arbitrary",),
                vmem_limit_bytes=_vmem_limit(est_fused)),
            cost_estimate=cost,
        )(adj_p, zT, b1c, w2T, b2m)
        return outT[0, :N]

    # ---------------- two-pass tiled path ------------------------------------
    tm = _pick_tile(Np, tm if tm is not None else 1024)
    tk = _pick_tile(Np, tk if tk is not None else 512)
    nt_i, nt_k = Np // tm, Np // tk

    # z^T split into k-blocks so the kernel indexes the leading dim with k.
    zT_blocks = z_p.reshape(nt_k, tk, H).transpose(0, 2, 1)          # [nt_k,H,tk]

    est1 = (2 * tk * tm * ab + 2 * H * Np * ab + H * tm * 4
            + 2 * tm * 4 + (1 << 20))
    cost1 = pl.CostEstimate(
        flops=int(2 * H * Np * Np + 2 * H * Np),
        transcendentals=0,
        bytes_accessed=int(Np * Np * ab + H * Np * ab + Np * 4))

    # ---- layer 1 (fused conv1 + ReLU + conv2 linear): emits s^T = (h @ W2)^T
    sT = pl.pallas_call(
        _gcn_layer1_kernel,
        out_shape=jax.ShapeDtypeStruct((1, Np), jnp.float32),
        grid=(nt_i, nt_k),                    # reduction axis last
        in_specs=[
            pl.BlockSpec((tk, tm), lambda i, k: (k, i)),            # M tiles
            pl.BlockSpec((nt_k, H, tk), lambda i, k: (0, 0, 0)),    # z^T resident
            pl.BlockSpec((H, 1), lambda i, k: (0, 0)),              # b1
            pl.BlockSpec((1, H), lambda i, k: (0, 0)),              # W2^T
        ],
        out_specs=pl.BlockSpec((1, tm), lambda i, k: (0, i)),       # lane-dense
        scratch_shapes=[pltpu.VMEM((H, tm), jnp.float32)],
        compiler_params=pltpu.CompilerParams(
            dimension_semantics=("parallel", "arbitrary"),
            vmem_limit_bytes=_vmem_limit(est1)),
        cost_estimate=cost1,
    )(adj_p, zT_blocks, b1c, w2T)

    sT_mxu = sT.astype(mxu_dtype)                                    # [1, Np]

    # ---- layer 2 (conv2 aggregation): out^T = s^T @ M + b2.
    # Full reduction dim in one (Np, TM2) slab -> 1-D grid, no acc scratch.
    l2_budget = 16 * 2**20
    tm2_cap = l2_budget // max(1, 2 * Np * ab)
    if tm2_cap >= 128:
        tm2 = _pick_tile(Np, min(tm2_cap, tm))
        est2 = 2 * Np * tm2 * ab + 2 * Np * ab + 2 * tm2 * 4 + (1 << 20)
        cost2 = pl.CostEstimate(
            flops=int(2 * Np * Np), transcendentals=0,
            bytes_accessed=int(Np * Np * ab + Np * ab + Np * 4))
        outT = pl.pallas_call(
            _gcn_layer2_kernel,
            out_shape=jax.ShapeDtypeStruct((1, Np), jnp.float32),
            grid=(Np // tm2,),
            in_specs=[
                pl.BlockSpec((Np, tm2), lambda i: (0, i)),          # M slab
                pl.BlockSpec((1, Np), lambda i: (0, 0)),            # s^T resident
                pl.BlockSpec((1, 1), lambda i: (0, 0)),             # b2
            ],
            out_specs=pl.BlockSpec((1, tm2), lambda i: (0, i)),
            compiler_params=pltpu.CompilerParams(
                dimension_semantics=("parallel",),
                vmem_limit_bytes=_vmem_limit(est2)),
            cost_estimate=cost2,
        )(adj_p, sT_mxu, b2m)
    else:
        # Even a 128-wide full-height Â slab busts the budget: plain-XLA
        # matvec fallback (still a single HBM stream of Â).
        outT = jnp.dot(sT_mxu, adj_p, preferred_element_type=jnp.float32) + b2m

    return outT[0, :N]     # matches torch .squeeze() -> [N]


def build_normalized_adjacency(edge_index, num_nodes):
    """Dense symmetric Â = D^{-1/2}(A + I)D^{-1/2} (GCNConv default norm).
    Note: duplicate edges are de-duplicated (set semantics), unlike PyG's
    scatter-add on multigraphs."""
    src, dst = edge_index[0], edge_index[1]
    A = jnp.zeros((num_nodes, num_nodes), jnp.float32).at[dst, src].set(1.0)
    A = jnp.maximum(A, A.T)                                       # symmetrize
    A = jnp.maximum(A, jnp.eye(num_nodes, dtype=jnp.float32))     # self loops
    deg = A.sum(axis=1)
    dinv = 1.0 / jnp.sqrt(deg)
    return A * dinv[:, None] * dinv[None, :]


if __name__ == "__main__":
    # Small demo: N=512 nodes, hidden=128 (module default), in_dim=16.
    N, in_dim, hidden, n_edges = 512, 16, 128, 1024

    key = jax.random.PRNGKey(0)
    ks = jax.random.split(key, 8)

    x = jax.random.normal(ks[0], (N, in_dim), jnp.float32)
    src = jax.random.randint(ks[1], (n_edges,), 0, N)
    dst = jax.random.randint(ks[2], (n_edges,), 0, N)
    edge_index = jnp.stack([jnp.concatenate([src, dst]),
                            jnp.concatenate([dst, src])])
    adj_hat = build_normalized_adjacency(edge_index, N)

    # conv1 / conv2 parameters (GCNConv applies bias AFTER aggregation).
    w1 = jax.random.normal(ks[3], (in_dim, hidden), jnp.float32) * (2.0 / in_dim) ** 0.5
    b1 = jax.random.normal(ks[4], (hidden,), jnp.float32) * 0.1
    w2 = jax.random.normal(ks[5], (hidden, 1), jnp.float32) * (2.0 / hidden) ** 0.5
    b2 = jax.random.normal(ks[6], (1,), jnp.float32) * 0.1

    # Pure-JAX f32 reference of the same forward (loose tol: bf16 MXU operands).
    h_ref = jax.nn.relu(adj_hat @ (x @ w1) + b1)
    ref = (adj_hat @ (h_ref @ w2) + b2)[:, 0]
    tol = 5e-2 * (1.0 + float(jnp.max(jnp.abs(ref))))

    # Path 1: fused single-pass kernel (Â VMEM-resident, streamed once).
    out_fused = learnable_selection_gcn_forward(x, adj_hat, w1, b1, w2, b2)
    # Path 2: tiled two-pass kernels (forced; grid (2,2) then (2,)).
    out_tiled = learnable_selection_gcn_forward(
        x, adj_hat, w1, b1, w2, b2, tm=256, tk=256, fuse_vmem_budget=0)
    jax.block_until_ready((out_fused, out_tiled))

    assert out_fused.shape == (N,) and out_tiled.shape == (N,)
    err_f = float(jnp.max(jnp.abs(out_fused - ref)))
    err_t = float(jnp.max(jnp.abs(out_tiled - ref)))
    assert err_f < tol, f"fused path max abs err {err_f} exceeds tol {tol}"
    assert err_t < tol, f"tiled path max abs err {err_t} exceeds tol {tol}"

    print("KERNEL_OK")
</pallas_src>

<mosaic_0001>
module attributes {stable_mosaic.version = 11 : i64} {
  func.func @_gcn_fused_kernel(%arg0: i32, %arg1: memref<512x512xbf16, #tpu.memory_space<vmem>>, %arg2: memref<128x512xbf16, #tpu.memory_space<vmem>>, %arg3: memref<128x1xf32, #tpu.memory_space<vmem>>, %arg4: memref<1x128xbf16, #tpu.memory_space<vmem>>, %arg5: memref<1x1xf32, #tpu.memory_space<vmem>>, %arg6: memref<1x512xf32, #tpu.memory_space<vmem>>) attributes {dimension_semantics = [#tpu.dimension_semantics<arbitrary>], iteration_bounds = array<i64: 1>, scalar_prefetch = 0 : i64, scratch_operands = 0 : i64, tpu.core_type = #tpu.core_type<tc>, window_params = [{pipeline_mode = #tpu.pipeline_mode<synchronous>, transform_indices = @transform_0, window_bounds = array<i64: 512, 512>}, {pipeline_mode = #tpu.pipeline_mode<synchronous>, transform_indices = @transform_1, window_bounds = array<i64: 128, 512>}, {pipeline_mode = #tpu.pipeline_mode<synchronous>, transform_indices = @transform_2, window_bounds = array<i64: 128, 1>}, {pipeline_mode = #tpu.pipeline_mode<synchronous>, transform_indices = @transform_3, window_bounds = array<i64: 1, 128>}, {pipeline_mode = #tpu.pipeline_mode<synchronous>, transform_indices = @transform_4, window_bounds = array<i64: 1, 1>}, {pipeline_mode = #tpu.pipeline_mode<synchronous>, transform_indices = @transform_5, window_bounds = array<i64: 1, 512>}]} {
    %c0 = arith.constant 0 : index
    %c0_0 = arith.constant 0 : index
    %0 = vector.load %arg2[%c0, %c0_0] : memref<128x512xbf16, #tpu.memory_space<vmem>>, vector<128x512xbf16>
    %c0_1 = arith.constant 0 : index
    %c0_2 = arith.constant 0 : index
    %1 = vector.load %arg1[%c0_1, %c0_2] : memref<512x512xbf16, #tpu.memory_space<vmem>>, vector<512x512xbf16>
    %cst = arith.constant dense<0.000000e+00> : vector<128x512xf32>
    %2 = tpu.matmul %0, %1, %cst {dimension_numbers = #tpu.dot_dimension_numbers<[1], [0], [0], [1], [0, 0, 1, 1], [], []>} : vector<128x512xbf16>, vector<512x512xbf16>, vector<128x512xf32> -> vector<128x512xf32>
    %c0_3 = arith.constant 0 : index
    %c0_4 = arith.constant 0 : index
    %3 = vector.load %arg3[%c0_3, %c0_4] : memref<128x1xf32, #tpu.memory_space<vmem>>, vector<128x1xf32>
    %4 = vector.broadcast %3 : vector<128x1xf32> to vector<128x512xf32>
    %5 = arith.addf %2, %4 : vector<128x512xf32>
    %cst_5 = arith.constant 0.000000e+00 : f32
    %6 = vector.broadcast %cst_5 : f32 to vector<128x512xf32>
    %7 = arith.maximumf %5, %6 : vector<128x512xf32>
    %c0_6 = arith.constant 0 : index
    %c0_7 = arith.constant 0 : index
    %8 = vector.load %arg4[%c0_6, %c0_7] : memref<1x128xbf16, #tpu.memory_space<vmem>>, vector<1x128xbf16>
    %9 = arith.truncf %7 : vector<128x512xf32> to vector<128x512xbf16>
    %cst_8 = arith.constant dense<0.000000e+00> : vector<1x512xf32>
    %10 = tpu.matmul %8, %9, %cst_8 {dimension_numbers = #tpu.dot_dimension_numbers<[1], [0], [0], [1], [0, 0, 1, 1], [], []>} : vector<1x128xbf16>, vector<128x512xbf16>, vector<1x512xf32> -> vector<1x512xf32>
    %11 = arith.truncf %10 : vector<1x512xf32> to vector<1x512xbf16>
    %c0_9 = arith.constant 0 : index
    %c0_10 = arith.constant 0 : index
    %12 = vector.load %arg1[%c0_9, %c0_10] : memref<512x512xbf16, #tpu.memory_space<vmem>>, vector<512x512xbf16>
    %cst_11 = arith.constant dense<0.000000e+00> : vector<1x512xf32>
    %13 = tpu.matmul %11, %12, %cst_11 {dimension_numbers = #tpu.dot_dimension_numbers<[1], [0], [0], [1], [0, 0, 1, 1], [], []>} : vector<1x512xbf16>, vector<512x512xbf16>, vector<1x512xf32> -> vector<1x512xf32>
    %c0_12 = arith.constant 0 : index
    %c0_13 = arith.constant 0 : index
    %14 = vector.load %arg5[%c0_12, %c0_13] : memref<1x1xf32, #tpu.memory_space<vmem>>, vector<1x1xf32>
    %15 = vector.broadcast %14 : vector<1x1xf32> to vector<1x512xf32>
    %16 = arith.addf %13, %15 : vector<1x512xf32>
    %c0_14 = arith.constant 0 : index
    %c0_15 = arith.constant 0 : index
    %17 = vector.load %arg6[%c0_14, %c0_15] : memref<1x512xf32, #tpu.memory_space<vmem>>, vector<1x512xf32>
    tpu.vector_store %arg6[%c0_14, %c0_15], %16 {strides = array<i32>} : memref<1x512xf32, #tpu.memory_space<vmem>>, vector<1x512xf32>,
    return
  }
  func.func @transform_0(%arg0: i32) -> (i32, i32) {
    %c0_i32 = arith.constant 0 : i32
    %c0_i32_0 = arith.constant 0 : i32
    %c0_i32_1 = arith.constant 0 : i32
    return %c0_i32, %c0_i32_0 : i32, i32
  }
  func.func @transform_1(%arg0: i32) -> (i32, i32) {
    %c0_i32 = arith.constant 0 : i32
    %c0_i32_0 = arith.constant 0 : i32
    %c0_i32_1 = arith.constant 0 : i32
    return %c0_i32, %c0_i32_0 : i32, i32
  }
  func.func @transform_2(%arg0: i32) -> (i32, i32) {
    %c0_i32 = arith.constant 0 : i32
    %c0_i32_0 = arith.constant 0 : i32
    %c0_i32_1 = arith.constant 0 : i32
    return %c0_i32, %c0_i32_0 : i32, i32
  }
  func.func @transform_3(%arg0: i32) -> (i32, i32) {
    %c0_i32 = arith.constant 0 : i32
    %c0_i32_0 = arith.constant 0 : i32
    %c0_i32_1 = arith.constant 0 : i32
    return %c0_i32, %c0_i32_0 : i32, i32
  }
  func.func @transform_4(%arg0: i32) -> (i32, i32) {
    %c0_i32 = arith.constant 0 : i32
    %c0_i32_0 = arith.constant 0 : i32
    %c0_i32_1 = arith.constant 0 : i32
    return %c0_i32, %c0_i32_0 : i32, i32
  }
  func.func @transform_5(%arg0: i32) -> (i32, i32) {
    %c0_i32 = arith.constant 0 : i32
    %c0_i32_0 = arith.constant 0 : i32
    %c0_i32_1 = arith.constant 0 : i32
    return %c0_i32, %c0_i32_0 : i32, i32
  }
}

</mosaic_0001>

<bundles_post_ra>
// kernel: tpu_custom_call.1
= control target key start
LH: loop header
LB: loop body
LE: loop exit
PB: predicated region body
PF: predicated region fallthrough
CT: control target
= control target key end

     0   :  { %s2875_s0 = inlined_call_operand.hbm [shape: bf16[512,512], index: 0, kind: input, shape index: {}]   ;;  %s2876_s1 = inlined_call_operand.hbm [shape: bf16[128,512], index: 1, kind: input, shape index: {}]   ;;  %s2877_s2 = inlined_call_operand.vmem [shape: f32[128,1], index: 2, kind: input, shape index: {}]   ;;  %s2878_s3 = inlined_call_operand.vmem [shape: bf16[1,128], index: 3, kind: input, shape index: {}]   ;;  %s2879_s4 = inlined_call_operand.<no memory space> [shape: f32[1,1], index: 4, kind: input, shape index: {}]   ;;  %s2880_s5 = inlined_call_operand.hbm [shape: f32[1,512], index: 5, kind: output, shape index: {}]  }
   0x1   :  { %v10_v0 = vstv %s2879_s4 }
   0x2   :  { %11 = vst [vmem:[#allocation2] sm:$0x1] %v10_v0 }
   0x3   :  { %12 = vsyncpa [#allocation4], 0 }
   0x4   :  { %13 = vsyncpa [#allocation7], 0 }
   0x5   :  { %14 = vsyncpa [#allocation5], 0  ;;  %s2708_s20 = smov [#allocation3]   ;;  %s2636_s24 = scalar_lea.hbm %s2875_s0, 16384 }
   0x6   :  { %s20_s21 = sshll.u32 %s2708_s20, 4  ;;  %p2637_p0 = scmp.ne.s32.totalorder %s2875_s0, %s2636_s24  ;;  %s21_s21 = int_to_ptr.vmem [resolvable:$true] %s20_s21 }
   0x7   :  { %p2640_p1 = scmp.lt.u32.totalorder %s2636_s24, %s2875_s0 }
   0x9   :  { %p2642_p2 = pnand %p2640_p1, %p2637_p0 }
   0xb   :  { %2645 = shalt.err (!%p2642_p2)
}
   0xc   :  { %s2646_s4 = scalar_lea.vmem %s21_s21, 16384  ;;  %p2651_p4 = scmp.lt.s32.totalorder %s21_s21, %s21_s21 }
   0xd   :  { %p2647_p3 = scmp.ne.s32.totalorder %s21_s21, %s2646_s4  ;;  %p2652_p5 = scmp.lt.s32.totalorder %s2646_s4, %s2646_s4 }
   0xf   :  { %p2653_p6 = por %p2652_p5, %p2651_p4 }
  0x11   :  { %p2654_p7 = pnand %p2653_p6, %p2647_p3 }
  0x13   :  { %2657 = shalt.err (!%p2654_p7)
}
  0x14   :  { %s2709_s29 = smov 256   ;;  %s2710_s30 = smov 16  }
  0x15   :  { %26 = dma.hbm_to_vmem [thread:$0]  %s2875_s0, 16384, %s21_s21, [#allocation4], %s2709_s29, %s2709_s29, %s2710_s30  }
  0x16   :  { %s2711_s8 = smov [#allocation6]   ;;  %s2658_s12 = scalar_lea.hbm %s2876_s1, 4096 }
  0x17   :  { %s32_s9 = sshll.u32 %s2711_s8, 4  ;;  %p2659_p8 = scmp.ne.s32.totalorder %s2876_s1, %s2658_s12  ;;  %s33_s9 = int_to_ptr.vmem [resolvable:$true] %s32_s9 }
  0x18   :  { %p2662_p9 = scmp.lt.u32.totalorder %s2658_s12, %s2876_s1 }
  0x1a   :  { %p2664_p10 = pnand %p2662_p9, %p2659_p8 }
  0x1c   :  { %2667 = shalt.err (!%p2664_p10)
}
  0x1d   :  { %s2668_s17 = scalar_lea.vmem %s33_s9, 4096  ;;  %p2673_p12 = scmp.lt.s32.totalorder %s33_s9, %s33_s9 }
  0x1e   :  { %p2669_p11 = scmp.ne.s32.totalorder %s33_s9, %s2668_s17  ;;  %p2674_p13 = scmp.lt.s32.totalorder %s2668_s17, %s2668_s17 }
  0x20   :  { %p2675_p0 = por %p2674_p13, %p2673_p12 }
  0x22   :  { %p2676_p1 = pnand %p2675_p0, %p2669_p11 }
  0x24   :  { %2679 = shalt.err (!%p2676_p1)
}
  0x25   :  { %38 = dma.hbm_to_vmem [thread:$0]  %s2876_s1, 4096, %s33_s9, [#allocation7], %s2709_s29, %s2709_s29, %s2710_s30  }
  0x26   :  { %2702 = dma.done.wait [#allocation4], 16384  }
  0x27   :  { %2703 = vsyncadd [#allocation4], 4294950912 }
  0x28   :  { %2704 = dma.done.wait [#allocation7], 4096  }
  0x29   :  { %2705 = vsyncadd [#allocation7], 4294963200  ;;  %v2276_v1 = vld [vmem:[#allocation3 + $0x4] ss:$16 sps:$4 sm:$0xff]   ;;  %v2278_v2 = vld [vmem:[#allocation3 + $0xc] ss:$16 sps:$4 sm:$0xff]  }
  0x2a   :  { %1108 = vmatprep.subr.bf16.mxu0 %v2276_v1  ;;  %v2280_v3 = vld [vmem:[#allocation3] ss:$16 sps:$4 sm:$0xff]   ;;  %v2281_v4 = vld [vmem:[#allocation3 + $0x8] ss:$16 sps:$4 sm:$0xff]   ;;  %1334 = vmatprep.subr.bf16.mxu1 %v2278_v2  ;;  %v2282_v5 = vld [vmem:[#allocation3 + $0x24] ss:$16 sps:$4 sm:$0xff]  }
  0x2b   :  { %1109 = vmatpush1.bf16.msra.mxu0 %v2280_v3  ;;  %1335 = vmatpush1.bf16.msra.mxu1 %v2281_v4  ;;  %v2284_v6 = vld [vmem:[#allocation3 + $0x2c] ss:$16 sps:$4 sm:$0xff]   ;;  %v2286_v7 = vld [vmem:[#allocation3 + $0x20] ss:$16 sps:$4 sm:$0xff]   ;;  %v2287_v8 = vld [vmem:[#allocation3 + $0x28] ss:$16 sps:$4 sm:$0xff]  }
  0x2c   :  { %1110 = vmatprep.subr.bf16.mxu0 %v2282_v5  ;;  %1336 = vmatprep.subr.bf16.mxu1 %v2284_v6  ;;  %v2288_v9 = vld [vmem:[#allocation3 + $0x44] ss:$16 sps:$4 sm:$0xff]   ;;  %v2290_v10 = vld [vmem:[#allocation3 + $0x4c] ss:$16 sps:$4 sm:$0xff]   ;;  %v2292_v11 = vld [vmem:[#allocation3 + $0x40] ss:$16 sps:$4 sm:$0xff]  }
  0x2d   :  { %v2293_v12 = vld [vmem:[#allocation3 + $0x48] ss:$16 sps:$4 sm:$0xff]   ;;  %v2294_v13 = vld [vmem:[#allocation3 + $0x64] ss:$16 sps:$4 sm:$0xff]   ;;  %v2296_v14 = vld [vmem:[#allocation3 + $0x6c] ss:$16 sps:$4 sm:$0xff]  }
  0x2e   :  { %v2298_v15 = vld [vmem:[#allocation3 + $0x60] ss:$16 sps:$4 sm:$0xff]   ;;  %v2299_v16 = vld [vmem:[#allocation3 + $0x68] ss:$16 sps:$4 sm:$0xff]   ;;  %v2300_v17 = vld [vmem:[#allocation3 + $0x84] ss:$16 sps:$4 sm:$0xff]  }
  0x2f   :  { %1111 = vmatpush1.bf16.msra.mxu0 %v2286_v7  ;;  %1337 = vmatpush1.bf16.msra.mxu1 %v2287_v8  ;;  %v2302_v18 = vld [vmem:[#allocation3 + $0x8c] ss:$16 sps:$4 sm:$0xff]   ;;  %v2304_v19 = vld [vmem:[#allocation3 + $0x80] ss:$16 sps:$4 sm:$0xff]   ;;  %v2305_v20 = vld [vmem:[#allocation3 + $0x88] ss:$16 sps:$4 sm:$0xff]  }
  0x30   :  { %1112 = vmatprep.subr.bf16.mxu0 %v2288_v9  ;;  %1338 = vmatprep.subr.bf16.mxu1 %v2290_v10  ;;  %v2306_v21 = vld [vmem:[#allocation3 + $0xa4] ss:$16 sps:$4 sm:$0xff]   ;;  %v2308_v22 = vld [vmem:[#allocation3 + $0xac] ss:$16 sps:$4 sm:$0xff]   ;;  %v2310_v23 = vld [vmem:[#allocation3 + $0xa0] ss:$16 sps:$4 sm:$0xff]  }
  0x31   :  { %v2311_v24 = vld [vmem:[#allocation3 + $0xa8] ss:$16 sps:$4 sm:$0xff]   ;;  %v2312_v25 = vld [vmem:[#allocation3 + $0xc4] ss:$16 sps:$4 sm:$0xff]   ;;  %v2314_v26 = vld [vmem:[#allocation3 + $0xcc] ss:$16 sps:$4 sm:$0xff]  }
  0x32   :  { %v2316_v27 = vld [vmem:[#allocation3 + $0xc0] ss:$16 sps:$4 sm:$0xff]   ;;  %v2317_v28 = vld [vmem:[#allocation3 + $0xc8] ss:$16 sps:$4 sm:$0xff]   ;;  %v2318_v29 = vld [vmem:[#allocation3 + $0xe4] ss:$16 sps:$4 sm:$0xff]  }
  0x33   :  { %1113 = vmatpush1.bf16.msra.mxu0 %v2292_v11  ;;  %1339 = vmatpush1.bf16.msra.mxu1 %v2293_v12  ;;  %v2320_v30 = vld [vmem:[#allocation3 + $0xec] ss:$16 sps:$4 sm:$0xff]   ;;  %v2322_v31 = vld [vmem:[#allocation3 + $0xe0] ss:$16 sps:$4 sm:$0xff]   ;;  %v2323_v32 = vld [vmem:[#allocation3 + $0xe8] ss:$16 sps:$4 sm:$0xff]  }
  0x34   :  { %1114 = vmatprep.subr.bf16.mxu0 %v2294_v13  ;;  %1340 = vmatprep.subr.bf16.mxu1 %v2296_v14  ;;  %v2324_v33 = vld [vmem:[#allocation3 + $0x104] ss:$16 sps:$4 sm:$0xff]   ;;  %v2326_v34 = vld [vmem:[#allocation3 + $0x10c] ss:$16 sps:$4 sm:$0xff]   ;;  %v2328_v35 = vld [vmem:[#allocation3 + $0x100] ss:$16 sps:$4 sm:$0xff]  }
  0x35   :  { %v2329_v36 = vld [vmem:[#allocation3 + $0x108] ss:$16 sps:$4 sm:$0xff]   ;;  %v2330_v37 = vld [vmem:[#allocation3 + $0x124] ss:$16 sps:$4 sm:$0xff]   ;;  %v2332_v38 = vld [vmem:[#allocation3 + $0x12c] ss:$16 sps:$4 sm:$0xff]  }
  0x36   :  { %v2334_v39 = vld [vmem:[#allocation3 + $0x120] ss:$16 sps:$4 sm:$0xff]   ;;  %v2335_v40 = vld [vmem:[#allocation3 + $0x128] ss:$16 sps:$4 sm:$0xff]   ;;  %v2336_v41 = vld [vmem:[#allocation3 + $0x144] ss:$16 sps:$4 sm:$0xff]  }
  0x37   :  { %1115 = vmatpush1.bf16.msra.mxu0 %v2298_v15  ;;  %1341 = vmatpush1.bf16.msra.mxu1 %v2299_v16  ;;  %v2338_v42 = vld [vmem:[#allocation3 + $0x14c] ss:$16 sps:$4 sm:$0xff]   ;;  %v2340_v43 = vld [vmem:[#allocation3 + $0x140] ss:$16 sps:$4 sm:$0xff]   ;;  %v2341_v44 = vld [vmem:[#allocation3 + $0x148] ss:$16 sps:$4 sm:$0xff]  }
  0x38   :  { %1116 = vmatprep.subr.bf16.mxu0 %v2300_v17  ;;  %1342 = vmatprep.subr.bf16.mxu1 %v2302_v18  ;;  %v2342_v45 = vld [vmem:[#allocation3 + $0x164] ss:$16 sps:$4 sm:$0xff]   ;;  %v2344_v46 = vld [vmem:[#allocation3 + $0x16c] ss:$16 sps:$4 sm:$0xff]   ;;  %v2346_v47 = vld [vmem:[#allocation3 + $0x160] ss:$16 sps:$4 sm:$0xff]  }
  0x39   :  { %v2347_v48 = vld [vmem:[#allocation3 + $0x168] ss:$16 sps:$4 sm:$0xff]   ;;  %v2374_v49 = vld [vmem:[#allocation6 + $0x4] ss:$16 sps:$4 sm:$0xff]   ;;  %v2350_v51 = vld [vmem:[#allocation3 + $0x18c] ss:$16 sps:$4 sm:$0xff]  }
  0x3a   :  { %v2348_v50 = vld [vmem:[#allocation3 + $0x184] ss:$16 sps:$4 sm:$0xff]   ;;  %1140 = vmatprep.mubr.bf16.mxu0 %v2374_v49  ;;  %1366 = vmatprep.mubr.bf16.mxu1 %v2374_v49  ;;  %v2352_v52 = vld [vmem:[#allocation3 + $0x180] ss:$16 sps:$4 sm:$0xff]   ;;  %v2353_v53 = vld [vmem:[#allocation3 + $0x188] ss:$16 sps:$4 sm:$0xff]  }
  0x3b   :  { %1117 = vmatpush1.bf16.msra.mxu0 %v2304_v19  ;;  %1343 = vmatpush1.bf16.msra.mxu1 %v2305_v20  ;;  %v2354_v54 = vld [vmem:[#allocation3 + $0x1a4] ss:$16 sps:$4 sm:$0xff]   ;;  %v2356_v55 = vld [vmem:[#allocation3 + $0x1ac] ss:$16 sps:$4 sm:$0xff]   ;;  %v2358_v56 = vld [vmem:[#allocation3 + $0x1a0] ss:$16 sps:$4 sm:$0xff]  }
  0x3c   :  { %1118 = vmatprep.subr.bf16.mxu0 %v2306_v21  ;;  %1344 = vmatprep.subr.bf16.mxu1 %v2308_v22  ;;  %v2359_v57 = vld [vmem:[#allocation3 + $0x1a8] ss:$16 sps:$4 sm:$0xff]   ;;  %v2360_v58 = vld [vmem:[#allocation3 + $0x1c4] ss:$16 sps:$4 sm:$0xff]   ;;  %v2362_v59 = vld [vmem:[#allocation3 + $0x1cc] ss:$16 sps:$4 sm:$0xff]  }
  0x3d   :  { %v2712_v60 = vmov 0   ;;  %v2364_v61 = vld [vmem:[#allocation3 + $0x1c0] ss:$16 sps:$4 sm:$0xff]   ;;  %v2365_v62 = vld [vmem:[#allocation3 + $0x1c8] ss:$16 sps:$4 sm:$0xff]  }
  0x3e   :  { %2274 = vset.pattern.permute.xlu0 %v2712_v60  ;;  %2275 = vset.pattern.permute.xlu1 %v2712_v60  ;;  %v2366_v63 = vld [vmem:[#allocation3 + $0x1e4] ss:$16 sps:$4 sm:$0xff]   ;;  %v2368_v0 = vld [vmem:[#allocation3 + $0x1ec] ss:$16 sps:$4 sm:$0xff]   ;;  %v2370_v1 = vld [vmem:[#allocation3 + $0x1e0] ss:$16 sps:$4 sm:$0xff]  }
  0x3f   :  { %1119 = vmatpush1.bf16.msra.mxu0 %v2310_v23  ;;  %1345 = vmatpush1.bf16.msra.mxu1 %v2311_v24  ;;  %v2371_v2 = vld [vmem:[#allocation3 + $0x1e8] ss:$16 sps:$4 sm:$0xff]   ;;  %v2377_v3 = vld [vmem:[#allocation3 + $0x204] ss:$16 sps:$4 sm:$0xff]   ;;  %v2380_v4 = vld [vmem:[#allocation3 + $0x20c] ss:$16 sps:$4 sm:$0xff]  }
  0x40   :  { %1120 = vmatprep.subr.bf16.mxu0 %v2312_v25  ;;  %1346 = vmatprep.subr.bf16.mxu1 %v2314_v26  ;;  %v2372_v5 = vld [vmem:[#allocation6] ss:$16 sps:$4 sm:$0xff]   ;;  %v2378_v7 = vld [vmem:[#allocation3 + $0x208] ss:$16 sps:$4 sm:$0xff]   ;;  %v2383_v8 = vld [vmem:[#allocation3 + $0x224] ss:$16 sps:$4 sm:$0xff]  }
  0x41   :  { %v2375_v6 = vld [vmem:[#allocation3 + $0x200] ss:$16 sps:$4 sm:$0xff]   ;;  %v2386_v9 = vld [vmem:[#allocation3 + $0x22c] ss:$16 sps:$4 sm:$0xff]   ;;  %v2387_v10 = vld [vmem:[#allocation6 + $0x24] ss:$16 sps:$4 sm:$0xff]  }
  0x42   :  { %v2381_v11 = vld [vmem:[#allocation3 + $0x220] ss:$16 sps:$4 sm:$0xff]   ;;  %v2384_v12 = vld [vmem:[#allocation3 + $0x228] ss:$16 sps:$4 sm:$0xff]   ;;  %v2392_v13 = vld [vmem:[#allocation3 + $0x244] ss:$16 sps:$4 sm:$0xff]  }
  0x43   :  { %1121 = vmatpush1.bf16.msra.mxu0 %v2316_v27  ;;  %1347 = vmatpush1.bf16.msra.mxu1 %v2317_v28  ;;  %v2395_v14 = vld [vmem:[#allocation3 + $0x24c] ss:$16 sps:$4 sm:$0xff]   ;;  %v2389_v15 = vld [vmem:[#allocation6 + $0x20] ss:$16 sps:$4 sm:$0xff]   ;;  %v2393_v17 = vld [vmem:[#allocation3 + $0x248] ss:$16 sps:$4 sm:$0xff]  }
  0x44   :  { %1122 = vmatprep.subr.bf16.mxu0 %v2318_v29  ;;  %1348 = vmatprep.subr.bf16.mxu1 %v2320_v30  ;;  %v2390_v16 = vld [vmem:[#allocation3 + $0x240] ss:$16 sps:$4 sm:$0xff]   ;;  %v2398_v18 = vld [vmem:[#allocation3 + $0x264] ss:$16 sps:$4 sm:$0xff]   ;;  %v2401_v19 = vld [vmem:[#allocation3 + $0x26c] ss:$16 sps:$4 sm:$0xff]  }
  0x45   :  { %v2402_v20 = vld [vmem:[#allocation6 + $0x44] ss:$16 sps:$4 sm:$0xff]   ;;  %v2396_v21 = vld [vmem:[#allocation3 + $0x260] ss:$16 sps:$4 sm:$0xff]   ;;  %v2399_v22 = vld [vmem:[#allocation3 + $0x268] ss:$16 sps:$4 sm:$0xff]  }
  0x46   :  { %v2407_v23 = vld [vmem:[#allocation3 + $0x284] ss:$16 sps:$4 sm:$0xff]   ;;  %v2410_v24 = vld [vmem:[#allocation3 + $0x28c] ss:$16 sps:$4 sm:$0xff]   ;;  %v2404_v25 = vld [vmem:[#allocation6 + $0x40] ss:$16 sps:$4 sm:$0xff]  }
  0x47   :  { %1123 = vmatpush1.bf16.msra.mxu0 %v2322_v31  ;;  %1349 = vmatpush1.bf16.msra.mxu1 %v2323_v32  ;;  %v2405_v26 = vld [vmem:[#allocation3 + $0x280] ss:$16 sps:$4 sm:$0xff]   ;;  %v2408_v27 = vld [vmem:[#allocation3 + $0x288] ss:$16 sps:$4 sm:$0xff]   ;;  %v2413_v28 = vld [vmem:[#allocation3 + $0x2a4] ss:$16 sps:$4 sm:$0xff]  }
  0x48   :  { %1124 = vmatprep.subr.bf16.mxu0 %v2324_v33  ;;  %1350 = vmatprep.subr.bf16.mxu1 %v2326_v34  ;;  %v2416_v29 = vld [vmem:[#allocation3 + $0x2ac] ss:$16 sps:$4 sm:$0xff]   ;;  %v2417_v30 = vld [vmem:[#allocation6 + $0x64] ss:$16 sps:$4 sm:$0xff]   ;;  %v2411_v31 = vld [vmem:[#allocation3 + $0x2a0] ss:$16 sps:$4 sm:$0xff]  }
  0x49   :  { %v2414_v32 = vld [vmem:[#allocation3 + $0x2a8] ss:$16 sps:$4 sm:$0xff]   ;;  %v2422_v33 = vld [vmem:[#allocation3 + $0x2c4] ss:$16 sps:$4 sm:$0xff]   ;;  %v2425_v34 = vld [vmem:[#allocation3 + $0x2cc] ss:$16 sps:$4 sm:$0xff]  }
  0x4a   :  { %v2446_v49 = vld [vmem:[#allocation3 + $0x32c] ss:$16 sps:$4 sm:$0xff]  }
  0x4b   :  { %1125 = vmatpush1.bf16.msra.mxu0 %v2328_v35  ;;  %1351 = vmatpush1.bf16.msra.mxu1 %v2329_v36  ;;  %v2419_v35 = vld [vmem:[#allocation6 + $0x60] ss:$16 sps:$4 sm:$0xff]  }
  0x4c   :  { %1126 = vmatprep.subr.bf16.mxu0 %v2330_v37  ;;  %1352 = vmatprep.subr.bf16.mxu1 %v2332_v38  ;;  %v2420_v36 = vld [vmem:[#allocation3 + $0x2c0] ss:$16 sps:$4 sm:$0xff]   ;;  %v2423_v37 = vld [vmem:[#allocation3 + $0x2c8] ss:$16 sps:$4 sm:$0xff]   ;;  %v2428_v38 = vld [vmem:[#allocation3 + $0x2e4] ss:$16 sps:$4 sm:$0xff]  }
  0x4f   :  { %1127 = vmatpush1.bf16.msra.mxu0 %v2334_v39  ;;  %1353 = vmatpush1.bf16.msra.mxu1 %v2335_v40  ;;  %v2431_v39 = vld [vmem:[#allocation3 + $0x2ec] ss:$16 sps:$4 sm:$0xff]   ;;  %v2432_v40 = vld [vmem:[#allocation6 + $0x84] ss:$16 sps:$4 sm:$0xff]  }
  0x50   :  { %1128 = vmatprep.subr.bf16.mxu0 %v2336_v41  ;;  %1354 = vmatprep.subr.bf16.mxu1 %v2338_v42  ;;  %v2426_v41 = vld [vmem:[#allocation3 + $0x2e0] ss:$16 sps:$4 sm:$0xff]   ;;  %v2429_v42 = vld [vmem:[#allocation3 + $0x2e8] ss:$16 sps:$4 sm:$0xff]  }
  0x53   :  { %1129 = vmatpush1.bf16.msra.mxu0 %v2340_v43  ;;  %1355 = vmatpush1.bf16.msra.mxu1 %v2341_v44  ;;  %v2437_v43 = vld [vmem:[#allocation3 + $0x304] ss:$16 sps:$4 sm:$0xff]   ;;  %v2440_v44 = vld [vmem:[#allocation3 + $0x30c] ss:$16 sps:$4 sm:$0xff]  }
  0x54   :  { %1130 = vmatprep.subr.bf16.mxu0 %v2342_v45  ;;  %1356 = vmatprep.subr.bf16.mxu1 %v2344_v46  ;;  %v2434_v45 = vld [vmem:[#allocation6 + $0x80] ss:$16 sps:$4 sm:$0xff]  }
  0x55   :  { %v2435_v46 = vld [vmem:[#allocation3 + $0x300] ss:$16 sps:$4 sm:$0xff]  }
  0x57   :  { %1131 = vmatpush1.bf16.msra.mxu0 %v2346_v47  ;;  %1357 = vmatpush1.bf16.msra.mxu1 %v2347_v48  ;;  %v2438_v47 = vld [vmem:[#allocation3 + $0x308] ss:$16 sps:$4 sm:$0xff]   ;;  %v2443_v48 = vld [vmem:[#allocation3 + $0x324] ss:$16 sps:$4 sm:$0xff]  }
  0x58   :  { %1132 = vmatprep.subr.bf16.mxu0 %v2348_v50  ;;  %1358 = vmatprep.subr.bf16.mxu1 %v2350_v51  ;;  %v2447_v50 = vld [vmem:[#allocation6 + $0xa4] ss:$16 sps:$4 sm:$0xff]   ;;  %v2441_v51 = vld [vmem:[#allocation3 + $0x320] ss:$16 sps:$4 sm:$0xff]  }
  0x5b   :  { %1133 = vmatpush1.bf16.msra.mxu0 %v2352_v52  ;;  %1359 = vmatpush1.bf16.msra.mxu1 %v2353_v53  ;;  %v2444_v52 = vld [vmem:[#allocation3 + $0x328] ss:$16 sps:$4 sm:$0xff]   ;;  %v2452_v53 = vld [vmem:[#allocation3 + $0x344] ss:$16 sps:$4 sm:$0xff]  }
  0x5c   :  { %1134 = vmatprep.subr.bf16.mxu0 %v2354_v54  ;;  %1360 = vmatprep.subr.bf16.mxu1 %v2356_v55  ;;  %v2455_v54 = vld [vmem:[#allocation3 + $0x34c] ss:$16 sps:$4 sm:$0xff]   ;;  %v2449_v55 = vld [vmem:[#allocation6 + $0xa0] ss:$16 sps:$4 sm:$0xff]  }
  0x5f   :  { %1135 = vmatpush1.bf16.msra.mxu0 %v2358_v56  ;;  %1361 = vmatpush1.bf16.msra.mxu1 %v2359_v57  ;;  %v2450_v56 = vld [vmem:[#allocation3 + $0x340] ss:$16 sps:$4 sm:$0xff]   ;;  %v2453_v57 = vld [vmem:[#allocation3 + $0x348] ss:$16 sps:$4 sm:$0xff]  }
  0x60   :  { %1136 = vmatprep.subr.bf16.mxu0 %v2360_v58  ;;  %1362 = vmatprep.subr.bf16.mxu1 %v2362_v59  ;;  %v2458_v58 = vld [vmem:[#allocation3 + $0x364] ss:$16 sps:$4 sm:$0xff]   ;;  %v2461_v59 = vld [vmem:[#allocation3 + $0x36c] ss:$16 sps:$4 sm:$0xff]  }
  0x63   :  { %1137 = vmatpush1.bf16.msra.mxu0 %v2364_v61  ;;  %1363 = vmatpush1.bf16.msra.mxu1 %v2365_v62  ;;  %v212_v61 = vld [vmem:[%s2877_s2] sm:$0xff] }
  0x64   :  { %1138 = vmatprep.subr.bf16.mxu0 %v2366_v63  ;;  %1364 = vmatprep.subr.bf16.mxu1 %v2368_v0  ;;  %v2462_v62 = vld [vmem:[#allocation6 + $0xc4] ss:$16 sps:$4 sm:$0xff]   ;;  %v2456_v63 = vld [vmem:[#allocation3 + $0x360] ss:$16 sps:$4 sm:$0xff]   ;;  %v2459_v0 = vld [vmem:[#allocation3 + $0x368] ss:$16 sps:$4 sm:$0xff]  }
  0x65   :  { %230 = vperm.xlu0 %2274, %v212_v61  }
  0x67   :  { %1139 = vmatpush1.bf16.msra.mxu0 %v2370_v1  ;;  %1365 = vmatpush1.bf16.msra.mxu1 %v2371_v2  ;;  %v213_v1 = vld [vmem:[%s2877_s2 + $0x8] sm:$0xff]  ;;  %v214_v2 = vld [vmem:[%s2877_s2 + $0x10] sm:$0xff] }
  0x68   :  { %1221 = vmatprep.subr.bf16.mxu0 %v2377_v3  ;;  %1447 = vmatprep.subr.bf16.mxu1 %v2380_v4  ;;  %v2467_v3 = vld [vmem:[#allocation3 + $0x384] ss:$16 sps:$4 sm:$0xff]   ;;  %v2470_v4 = vld [vmem:[#allocation3 + $0x38c] ss:$16 sps:$4 sm:$0xff]  }
  0x69   :  { %235 = vperm.xlu0 %2274, %v213_v1   ;;  %240 = vperm.xlu1 %2275, %v214_v2  }
  0x6a   :  { %1141 = vmatmul.mubr.bf16.vlgmr.msra.gmra.mrb[0].mxu0 %v2372_v5  ;;  %1367 = vmatmul.mubr.bf16.vlgmr.msra.gmra.mrb[0].mxu1 %v2372_v5  ;;  %v2464_v5 = vld [vmem:[#allocation6 + $0xc0] ss:$16 sps:$4 sm:$0xff]  }
  0x6b   :  { %1222 = vmatpush1.bf16.msra.mxu0 %v2375_v6  ;;  %1448 = vmatpush1.bf16.msra.mxu1 %v2378_v7  ;;  %v2465_v6 = vld [vmem:[#allocation3 + $0x380] ss:$16 sps:$4 sm:$0xff]   ;;  %v2468_v7 = vld [vmem:[#allocation3 + $0x388] ss:$16 sps:$4 sm:$0xff]  }
  0x6c   :  { %1223 = vmatprep.subr.bf16.mxu0 %v2383_v8  ;;  %1449 = vmatprep.subr.bf16.mxu1 %v2386_v9  ;;  %v2473_v8 = vld [vmem:[#allocation3 + $0x3a4] ss:$16 sps:$4 sm:$0xff]   ;;  %v2476_v9 = vld [vmem:[#allocation3 + $0x3ac] ss:$16 sps:$4 sm:$0xff]  }
  0x6d   :  { %1150 = vmatprep.mubr.bf16.mxu0 %v2387_v10  ;;  %1376 = vmatprep.mubr.bf16.mxu1 %v2387_v10  ;;  %v2477_v10 = vld [vmem:[#allocation6 + $0xe4] ss:$16 sps:$4 sm:$0xff]  }
  0x6f   :  { %1224 = vmatpush1.bf16.msra.mxu0 %v2381_v11  ;;  %1450 = vmatpush1.bf16.msra.mxu1 %v2384_v12  ;;  %v2471_v11 = vld [vmem:[#allocation3 + $0x3a0] ss:$16 sps:$4 sm:$0xff]   ;;  %v2474_v12 = vld [vmem:[#allocation3 + $0x3a8] ss:$16 sps:$4 sm:$0xff]  }
  0x70   :  { %1225 = vmatprep.subr.bf16.mxu0 %v2392_v13  ;;  %1451 = vmatprep.subr.bf16.mxu1 %v2395_v14  ;;  %v216_v13 = vld [vmem:[%s2877_s2 + $0x20] sm:$0xff]  ;;  %v215_v14 = vld [vmem:[%s2877_s2 + $0x18] sm:$0xff] }
  0x71   :  { %250 = vperm.xlu0 %2274, %v216_v13   ;;  %245 = vperm.xlu1 %2275, %v215_v14  }
  0x72   :  { %1151 = vmatmul.mubr.bf16.gmra.mrb[4].mxu0 %v2389_v15  ;;  %1377 = vmatmul.mubr.bf16.gmra.mrb[4].mxu1 %v2389_v15  ;;  %v2789_v15 = vld [vmem:[#allocation3 + $0x3c4] ss:$16 sps:$4 sm:$0xff]  }
  0x73   :  { %1226 = vmatpush1.bf16.msra.mxu0 %v2390_v16  ;;  %1452 = vmatpush1.bf16.msra.mxu1 %v2393_v17  ;;  %v2791_v16 = vld [vmem:[#allocation3 + $0x3cc] ss:$16 sps:$4 sm:$0xff]   ;;  %v2479_v17 = vld [vmem:[#allocation6 + $0xe0] ss:$16 sps:$4 sm:$0xff]  }
  0x74   :  { %1227 = vmatprep.subr.bf16.mxu0 %v2398_v18  ;;  %1453 = vmatprep.subr.bf16.mxu1 %v2401_v19  ;;  %v2793_v18 = vld [vmem:[#allocation3 + $0x3c0] ss:$16 sps:$4 sm:$0xff]   ;;  %v2795_v19 = vld [vmem:[#allocation3 + $0x3c8] ss:$16 sps:$4 sm:$0xff]  }
  0x75   :  { %1160 = vmatprep.mubr.bf16.mxu0 %v2402_v20  ;;  %1386 = vmatprep.mubr.bf16.mxu1 %v2402_v20  ;;  %v2799_v20 = vld [vmem:[#allocation3 + $0x3e4] ss:$16 sps:$4 sm:$0xff]  }
  0x77   :  { %1228 = vmatpush1.bf16.msra.mxu0 %v2396_v21  ;;  %1454 = vmatpush1.bf16.msra.mxu1 %v2399_v22  ;;  %v2801_v21 = vld [vmem:[#allocation3 + $0x3ec] ss:$16 sps:$4 sm:$0xff]  }
  0x78   :  { %1229 = vmatprep.subr.bf16.mxu0 %v2407_v23  ;;  %1455 = vmatprep.subr.bf16.mxu1 %v2410_v24  ;;  %v2494_v22 = vld [vmem:[#allocation6 + $0xc] ss:$16 sps:$4 sm:$0xff]   ;;  %v2803_v23 = vld [vmem:[#allocation3 + $0x3e0] ss:$16 sps:$4 sm:$0xff]   ;;  %v2807_v24 = vld [vmem:[#allocation3 + $0x3e8] ss:$16 sps:$4 sm:$0xff]  }
  0x7a   :  { %1161 = vmatmul.mubr.bf16.gmra.mrb[8].mxu0 %v2404_v25  ;;  %1387 = vmatmul.mubr.bf16.gmra.mrb[8].mxu1 %v2404_v25  ;;  %v218_v25 = vld [vmem:[%s2877_s2 + $0x30] sm:$0xff] }
  0x7b   :  { %1230 = vmatpush1.bf16.msra.mxu0 %v2405_v26  ;;  %1456 = vmatpush1.bf16.msra.mxu1 %v2408_v27  ;;  %v217_v26 = vld [vmem:[%s2877_s2 + $0x28] sm:$0xff] }
  0x7c   :  { %1231 = vmatprep.subr.bf16.mxu0 %v2413_v28  ;;  %1457 = vmatprep.subr.bf16.mxu1 %v2416_v29  ;;  %v2492_v27 = vld [vmem:[#allocation6 + $0x8] ss:$16 sps:$4 sm:$0xff]   ;;  %v2495_v28 = vld [vmem:[#allocation6 + $0x2c] ss:$16 sps:$4 sm:$0xff]  }
  0x7d   :  { %1170 = vmatprep.mubr.bf16.mxu0 %v2417_v30  ;;  %1396 = vmatprep.mubr.bf16.mxu1 %v2417_v30  ;;  %v220_v29 = vld [vmem:[%s2877_s2 + $0x40] sm:$0xff]  ;;  %v219_v30 = vld [vmem:[%s2877_s2 + $0x38] sm:$0xff] }
  0x7e   :  { %260 = vperm.xlu0 %2274, %v218_v25   ;;  %255 = vperm.xlu1 %2275, %v217_v26  }
  0x7f   :  { %1232 = vmatpush1.bf16.msra.mxu0 %v2411_v31  ;;  %1458 = vmatpush1.bf16.msra.mxu1 %v2414_v32  ;;  %v222_v31 = vld [vmem:[%s2877_s2 + $0x50] sm:$0xff]  ;;  %v221_v32 = vld [vmem:[%s2877_s2 + $0x48] sm:$0xff] }
  0x80   :  { %1233 = vmatprep.subr.bf16.mxu0 %v2422_v33  ;;  %1459 = vmatprep.subr.bf16.mxu1 %v2425_v34  ;;  %v2497_v33 = vld [vmem:[#allocation6 + $0x28] ss:$16 sps:$4 sm:$0xff]   ;;  %v2498_v34 = vld [vmem:[#allocation6 + $0x4c] ss:$16 sps:$4 sm:$0xff]  }
  0x82   :  { %1171 = vmatmul.mubr.bf16.gmra.mrb[12].mxu0 %v2419_v35  ;;  %1397 = vmatmul.mubr.bf16.gmra.mrb[12].mxu1 %v2419_v35  ;;  %v224_v35 = vld [vmem:[%s2877_s2 + $0x60] sm:$0xff] }
  0x83   :  { %1234 = vmatpush1.bf16.msra.mxu0 %v2420_v36  ;;  %1460 = vmatpush1.bf16.msra.mxu1 %v2423_v37  ;;  %v223_v36 = vld [vmem:[%s2877_s2 + $0x58] sm:$0xff]  ;;  %v226_v37 = vld [vmem:[%s2877_s2 + $0x70] sm:$0xff] }
  0x84   :  { %1235 = vmatprep.subr.bf16.mxu0 %v2428_v38  ;;  %1461 = vmatprep.subr.bf16.mxu1 %v2431_v39  ;;  %v225_v38 = vld [vmem:[%s2877_s2 + $0x68] sm:$0xff] }
  0x85   :  { %1180 = vmatprep.mubr.bf16.mxu0 %v2432_v40  ;;  %1406 = vmatprep.mubr.bf16.mxu1 %v2432_v40  ;;  %v2500_v39 = vld [vmem:[#allocation6 + $0x48] ss:$16 sps:$4 sm:$0xff]   ;;  %v2501_v40 = vld [vmem:[#allocation6 + $0x6c] ss:$16 sps:$4 sm:$0xff]  }
  0x86   :  { %270 = vperm.xlu0 %2274, %v220_v29   ;;  %265 = vperm.xlu1 %2275, %v219_v30  }
  0x87   :  { %1236 = vmatpush1.bf16.msra.mxu0 %v2426_v41  ;;  %1462 = vmatpush1.bf16.msra.mxu1 %v2429_v42  ;;  %v1743_v41 = vld [vmem:[#allocation2] sm:$0x1]  ;;  %v227_v42 = vld [vmem:[%s2877_s2 + $0x78] sm:$0xff] }
  0x88   :  { %1237 = vmatprep.subr.bf16.mxu0 %v2437_v43  ;;  %1463 = vmatprep.subr.bf16.mxu1 %v2440_v44  ;;  %v2503_v43 = vld [vmem:[#allocation6 + $0x68] ss:$16 sps:$4 sm:$0xff]   ;;  %v2504_v44 = vld [vmem:[#allocation6 + $0x8c] ss:$16 sps:$4 sm:$0xff]  }
  0x8a   :  { %1181 = vmatmul.mubr.bf16.gmra.mrb[16].mxu0 %v2434_v45  ;;  %1407 = vmatmul.mubr.bf16.gmra.mrb[16].mxu1 %v2434_v45  ;;  %v2506_v45 = vld [vmem:[#allocation6 + $0x88] ss:$16 sps:$4 sm:$0xff]  }
  0x8b   :  { %1238 = vmatpush1.bf16.msra.mxu0 %v2435_v46  ;;  %1464 = vmatpush1.bf16.msra.mxu1 %v2438_v47  ;;  %v2507_v46 = vld [vmem:[#allocation6 + $0xac] ss:$16 sps:$4 sm:$0xff]   ;;  %v2509_v47 = vld [vmem:[#allocation6 + $0xa8] ss:$16 sps:$4 sm:$0xff]  }
  0x8c   :  { %1239 = vmatprep.subr.bf16.mxu0 %v2443_v48  ;;  %1465 = vmatprep.subr.bf16.mxu1 %v2446_v49  ;;  %v2510_v48 = vld [vmem:[#allocation6 + $0xcc] ss:$16 sps:$4 sm:$0xff]   ;;  %v2512_v49 = vld [vmem:[#allocation6 + $0xc8] ss:$16 sps:$4 sm:$0xff]  }
  0x8d   :  { %1190 = vmatprep.mubr.bf16.mxu0 %v2447_v50  ;;  %1416 = vmatprep.mubr.bf16.mxu1 %v2447_v50  ;;  %v2513_v50 = vld [vmem:[#allocation6 + $0xec] ss:$16 sps:$4 sm:$0xff]  }
  0x8e   :  { %280 = vperm.xlu0 %2274, %v222_v31   ;;  %275 = vperm.xlu1 %2275, %v221_v32  }
  0x8f   :  { %1240 = vmatpush1.bf16.msra.mxu0 %v2441_v51  ;;  %1466 = vmatpush1.bf16.msra.mxu1 %v2444_v52  ;;  %v2515_v51 = vld [vmem:[#allocation6 + $0xe8] ss:$16 sps:$4 sm:$0xff]  }
  0x90   :  { %1241 = vmatprep.subr.bf16.mxu0 %v2452_v53  ;;  %1467 = vmatprep.subr.bf16.mxu1 %v2455_v54 }
  0x92   :  { %1191 = vmatmul.mubr.bf16.gmra.mrb[20].mxu0 %v2449_v55  ;;  %1417 = vmatmul.mubr.bf16.gmra.mrb[20].mxu1 %v2449_v55 }
  0x93   :  { %1242 = vmatpush1.bf16.msra.mxu0 %v2450_v56  ;;  %1468 = vmatpush1.bf16.msra.mxu1 %v2453_v57 }
  0x94   :  { %1243 = vmatprep.subr.bf16.mxu0 %v2458_v58  ;;  %1469 = vmatprep.subr.bf16.mxu1 %v2461_v59 }
  0x95   :  { %1200 = vmatprep.mubr.bf16.mxu0 %v2462_v62  ;;  %1426 = vmatprep.mubr.bf16.mxu1 %v2462_v62 }
  0x96   :  { %290 = vperm.xlu0 %2274, %v224_v35   ;;  %285 = vperm.xlu1 %2275, %v223_v36  }
  0x97   :  { %1244 = vmatpush1.bf16.msra.mxu0 %v2456_v63  ;;  %1470 = vmatpush1.bf16.msra.mxu1 %v2459_v0 }
  0x98   :  { %1245 = vmatprep.subr.bf16.mxu0 %v2467_v3  ;;  %1471 = vmatprep.subr.bf16.mxu1 %v2470_v4 }
  0x9a   :  { %1201 = vmatmul.mubr.bf16.gmra.mrb[24].mxu0 %v2464_v5  ;;  %1427 = vmatmul.mubr.bf16.gmra.mrb[24].mxu1 %v2464_v5 }
  0x9b   :  { %1246 = vmatpush1.bf16.msra.mxu0 %v2465_v6  ;;  %1472 = vmatpush1.bf16.msra.mxu1 %v2468_v7 }
  0x9c   :  { %1247 = vmatprep.subr.bf16.mxu0 %v2473_v8  ;;  %1473 = vmatprep.subr.bf16.mxu1 %v2476_v9 }
  0x9d   :  { %1210 = vmatprep.mubr.bf16.mxu0 %v2477_v10  ;;  %1436 = vmatprep.mubr.bf16.mxu1 %v2477_v10 }
  0x9e   :  { %300 = vperm.xlu0 %2274, %v226_v37   ;;  %295 = vperm.xlu1 %2275, %v225_v38  }
  0x9f   :  { %1248 = vmatpush1.bf16.msra.mxu0 %v2471_v11  ;;  %1474 = vmatpush1.bf16.msra.mxu1 %v2474_v12 }
  0xa0   :  { %1249 = vmatprep.subr.bf16.mxu0 %v2789_v15  ;;  %1475 = vmatprep.subr.bf16.mxu1 %v2791_v16 }
  0xa2   :  { %1211 = vmatmul.mubr.bf16.gmra.mrb[28].mxu0 %v2479_v17  ;;  %1437 = vmatmul.mubr.bf16.gmra.mrb[28].mxu1 %v2479_v17 }
  0xa3   :  { %1250 = vmatpush1.bf16.msra.mxu0 %v2793_v18  ;;  %1476 = vmatpush1.bf16.msra.mxu1 %v2795_v19 }
  0xa4   :  { %1251 = vmatprep.subr.bf16.mxu0 %v2799_v20  ;;  %1477 = vmatprep.subr.bf16.mxu1 %v2801_v21 }
  0xa5   :  { %1253 = vmatprep.mubr.bf16.mxu0 %v2494_v22  ;;  %1479 = vmatprep.mubr.bf16.mxu1 %v2494_v22 }
  0xa6   :  { %1746 = vperm.xlu0 %2274, %v1743_v41   ;;  %305 = vperm.xlu1 %2275, %v227_v42  }
  0xa7   :  { %1252 = vmatpush1.bf16.msra.mxu0 %v2803_v23  ;;  %1478 = vmatpush1.bf16.msra.mxu1 %v2807_v24 }
  0xaa   :  { %1254 = vmatmul.mubr.bf16.vlgmr.msra.gmra.mrb[0].mxu0 %v2492_v27  ;;  %1480 = vmatmul.mubr.bf16.vlgmr.msra.gmra.mrb[0].mxu1 %v2492_v27 }
  0xab   :  { %1263 = vmatprep.mubr.bf16.mxu0 %v2495_v28  ;;  %1489 = vmatprep.mubr.bf16.mxu1 %v2495_v28 }
  0xb2   :  { %1264 = vmatmul.mubr.bf16.gmra.mrb[4].mxu0 %v2497_v33  ;;  %1490 = vmatmul.mubr.bf16.gmra.mrb[4].mxu1 %v2497_v33 }
  0xb3   :  { %1273 = vmatprep.mubr.bf16.mxu0 %v2498_v34  ;;  %1499 = vmatprep.mubr.bf16.mxu1 %v2498_v34 }
  0xba   :  { %1274 = vmatmul.mubr.bf16.gmra.mrb[8].mxu0 %v2500_v39  ;;  %1500 = vmatmul.mubr.bf16.gmra.mrb[8].mxu1 %v2500_v39 }
  0xbb   :  { %1283 = vmatprep.mubr.bf16.mxu0 %v2501_v40  ;;  %1509 = vmatprep.mubr.bf16.mxu1 %v2501_v40 }
  0xc2   :  { %1284 = vmatmul.mubr.bf16.gmra.mrb[12].mxu0 %v2503_v43  ;;  %1510 = vmatmul.mubr.bf16.gmra.mrb[12].mxu1 %v2503_v43 }
  0xc3   :  { %1293 = vmatprep.mubr.bf16.mxu0 %v2504_v44  ;;  %1519 = vmatprep.mubr.bf16.mxu1 %v2504_v44 }
  0xca   :  { %1294 = vmatmul.mubr.bf16.gmra.mrb[16].mxu0 %v2506_v45  ;;  %1520 = vmatmul.mubr.bf16.gmra.mrb[16].mxu1 %v2506_v45 }
  0xcb   :  { %1303 = vmatprep.mubr.bf16.mxu0 %v2507_v46  ;;  %1529 = vmatprep.mubr.bf16.mxu1 %v2507_v46 }
  0xd2   :  { %1304 = vmatmul.mubr.bf16.gmra.mrb[20].mxu0 %v2509_v47  ;;  %1530 = vmatmul.mubr.bf16.gmra.mrb[20].mxu1 %v2509_v47 }
  0xd3   :  { %1313 = vmatprep.mubr.bf16.mxu0 %v2510_v48  ;;  %1539 = vmatprep.mubr.bf16.mxu1 %v2510_v48 }
  0xda   :  { %1314 = vmatmul.mubr.bf16.gmra.mrb[24].mxu0 %v2512_v49  ;;  %1540 = vmatmul.mubr.bf16.gmra.mrb[24].mxu1 %v2512_v49 }
  0xdb   :  { %1323 = vmatprep.mubr.bf16.mxu0 %v2513_v50  ;;  %1549 = vmatprep.mubr.bf16.mxu1 %v2513_v50 }
  0xe2   :  { %1324 = vmatmul.mubr.bf16.gmra.mrb[28].mxu0 %v2515_v51  ;;  %1550 = vmatmul.mubr.bf16.gmra.mrb[28].mxu1 %v2515_v51 }
  0xe3   :  { %1689 = vmatprep.mubr.bf16.mxu0 %v2712_v60  ;;  %1730 = vmatprep.mubr.bf16.mxu1 %v2712_v60 }
  0xe4   :  { %v231_v52 = vpop.permute.xlu0 %230 }
  0xe8   :  { %v236_v53 = vpop.permute.xlu0 %235  ;;  %v241_v54 = vpop.permute.xlu1 %240 }
  0xf0   :  { %v246_v17 = vpop.permute.xlu1 %245 }
 0x17d   :  { %v1255_v55 = vpop.f32.mrb[0].mxu0  ;;  %v1481_v56 = vpop.f32.mrb[0].mxu1 }
 0x17e   :  { %v2127_v57 = vadd.f32 %v1255_v55, %v231_v52  ;;  %v2159_v58 = vadd.f32 %v1481_v56, %v231_v52  ;;  %v1257_v59 = vpop.f32.mrb[1].mxu0  ;;  %v1483_v61 = vpop.f32.mrb[1].mxu1 }
 0x17f   :  { %v2128_v62 = vadd.f32 %v1257_v59, %v231_v52  ;;  %v2160_v63 = vadd.f32 %v1483_v61, %v231_v52  ;;  %v1259_v0 = vpop.f32.mrb[2].mxu0  ;;  %v1485_v1 = vpop.f32.mrb[2].mxu1 }
 0x180   :  { %v2129_v2 = vadd.f32 %v1259_v0, %v236_v53  ;;  %v2161_v3 = vadd.f32 %v1485_v1, %v236_v53  ;;  %v1261_v4 = vpop.f32.mrb[3].mxu0  ;;  %v1487_v5 = vpop.f32.mrb[3].mxu1  ;;  %v1560_v60 = vmax.f32 %v2127_v57, 0.0  ;;  %v1562_v8 = vmax.f32 %v2159_v58, 0.0 }
 0x181   :  { %v2130_v6 = vadd.f32 %v1261_v4, %v236_v53  ;;  %v2162_v7 = vadd.f32 %v1487_v5, %v236_v53  ;;  %v1561_v11 = vmax.f32 %v2128_v62, 0.0  ;;  %v1563_v12 = vmax.f32 %v2160_v63, 0.0  ;;  %v251_v52 = vpop.permute.xlu0 %250  ;;  %v256_v53 = vpop.permute.xlu1 %255 }
 0x182   :  { %v1564_v9 = vmax.f32 %v2129_v2, 0.0  ;;  %v1566_v10 = vmax.f32 %v2161_v3, 0.0 }
 0x183   :  { %v1565_v13 = vmax.f32 %v2130_v6, 0.0  ;;  %v1567_v14 = vmax.f32 %v2162_v7, 0.0 }
 0x184   :  { %v1625_v22 = vpack.c.bf16 %v1564_v9, %v1560_v60  ;;  %v1627_v25 = vpack.c.bf16 %v1566_v10, %v1562_v8 }
 0x185   :  { %v1626_v26 = vpack.c.bf16 %v1565_v13, %v1561_v11  ;;  %v1628_v27 = vpack.c.bf16 %v1567_v14, %v1563_v12  ;;  %v1265_v28 = vpop.f32.mrb[4].mxu0  ;;  %v1491_v29 = vpop.f32.mrb[4].mxu1 }
 0x186   :  { %v2131_v30 = vadd.f32 %v1265_v28, %v241_v54  ;;  %v2163_v31 = vadd.f32 %v1491_v29, %v241_v54  ;;  %v1267_v32 = vpop.f32.mrb[5].mxu0  ;;  %v1493_v33 = vpop.f32.mrb[5].mxu1 }
 0x187   :  { %v2132_v34 = vadd.f32 %v1267_v32, %v241_v54  ;;  %v2164_v35 = vadd.f32 %v1493_v33, %v241_v54  ;;  %v1269_v36 = vpop.f32.mrb[6].mxu0  ;;  %v1495_v37 = vpop.f32.mrb[6].mxu1  ;;  %1657 = vmatprep.subr.bf16.mxu0 %v1626_v26  ;;  %1698 = vmatprep.subr.bf16.mxu1 %v1628_v27 }
 0x188   :  { %v2133_v38 = vadd.f32 %v1269_v36, %v246_v17  ;;  %v2165_v39 = vadd.f32 %v1495_v37, %v246_v17  ;;  %v1271_v40 = vpop.f32.mrb[7].mxu0  ;;  %v1497_v41 = vpop.f32.mrb[7].mxu1  ;;  %1658 = vmatpush1.bf16.msra.mxu0 %v1625_v22  ;;  %1699 = vmatpush1.bf16.msra.mxu1 %v1627_v25  ;;  %v1568_v44 = vmax.f32 %v2131_v30, 0.0  ;;  %v1570_v45 = vmax.f32 %v2163_v31, 0.0 }
 0x189   :  { %v2134_v42 = vadd.f32 %v1271_v40, %v246_v17  ;;  %v2166_v43 = vadd.f32 %v1497_v41, %v246_v17  ;;  %v1569_v48 = vmax.f32 %v2132_v34, 0.0  ;;  %v1571_v49 = vmax.f32 %v2164_v35, 0.0  ;;  %v261_v26 = vpop.permute.xlu0 %260  ;;  %v266_v27 = vpop.permute.xlu1 %265 }
 0x18a   :  { %v1572_v46 = vmax.f32 %v2133_v38, 0.0  ;;  %v1574_v47 = vmax.f32 %v2165_v39, 0.0 }
 0x18b   :  { %v1573_v50 = vmax.f32 %v2134_v42, 0.0  ;;  %v1575_v51 = vmax.f32 %v2166_v43, 0.0 }
 0x18c   :  { %v1629_v54 = vpack.c.bf16 %v1572_v46, %v1568_v44  ;;  %v1631_v55 = vpack.c.bf16 %v1574_v47, %v1570_v45 }
 0x18d   :  { %v1630_v56 = vpack.c.bf16 %v1573_v50, %v1569_v48  ;;  %v1632_v57 = vpack.c.bf16 %v1575_v51, %v1571_v49  ;;  %v1275_v58 = vpop.f32.mrb[8].mxu0  ;;  %v1501_v59 = vpop.f32.mrb[8].mxu1 }
 0x18e   :  { %v2135_v61 = vadd.f32 %v1275_v58, %v251_v52  ;;  %v2167_v62 = vadd.f32 %v1501_v59, %v251_v52  ;;  %v1277_v63 = vpop.f32.mrb[9].mxu0  ;;  %v1503_v0 = vpop.f32.mrb[9].mxu1 }
 0x18f   :  { %v2136_v1 = vadd.f32 %v1277_v63, %v251_v52  ;;  %v2168_v2 = vadd.f32 %v1503_v0, %v251_v52  ;;  %v1279_v3 = vpop.f32.mrb[10].mxu0  ;;  %v1505_v4 = vpop.f32.mrb[10].mxu1  ;;  %1659 = vmatprep.subr.bf16.mxu0 %v1630_v56  ;;  %1700 = vmatprep.subr.bf16.mxu1 %v1632_v57 }
 0x190   :  { %v2137_v5 = vadd.f32 %v1279_v3, %v256_v53  ;;  %v2169_v6 = vadd.f32 %v1505_v4, %v256_v53  ;;  %v1281_v7 = vpop.f32.mrb[11].mxu0  ;;  %v1507_v60 = vpop.f32.mrb[11].mxu1  ;;  %1660 = vmatpush1.bf16.msra.mxu0 %v1629_v54  ;;  %1701 = vmatpush1.bf16.msra.mxu1 %v1631_v55  ;;  %v1576_v10 = vmax.f32 %v2135_v61, 0.0  ;;  %v1578_v11 = vmax.f32 %v2167_v62, 0.0 }
 0x191   :  { %v2138_v8 = vadd.f32 %v1281_v7, %v256_v53  ;;  %v2170_v9 = vadd.f32 %v1507_v60, %v256_v53  ;;  %v1577_v14 = vmax.f32 %v2136_v1, 0.0  ;;  %v1579_v17 = vmax.f32 %v2168_v2, 0.0  ;;  %v271_v56 = vpop.permute.xlu0 %270  ;;  %v276_v57 = vpop.permute.xlu1 %275 }
 0x192   :  { %v1580_v12 = vmax.f32 %v2137_v5, 0.0  ;;  %v1582_v13 = vmax.f32 %v2169_v6, 0.0 }
 0x193   :  { %v1581_v22 = vmax.f32 %v2138_v8, 0.0  ;;  %v1583_v25 = vmax.f32 %v2170_v9, 0.0 }
 0x194   :  { %v1633_v28 = vpack.c.bf16 %v1580_v12, %v1576_v10  ;;  %v1635_v29 = vpack.c.bf16 %v1582_v13, %v1578_v11 }
 0x195   :  { %v1634_v30 = vpack.c.bf16 %v1581_v22, %v1577_v14  ;;  %v1636_v31 = vpack.c.bf16 %v1583_v25, %v1579_v17  ;;  %v1285_v32 = vpop.f32.mrb[12].mxu0  ;;  %v1511_v33 = vpop.f32.mrb[12].mxu1 }
 0x196   :  { %v2139_v34 = vadd.f32 %v1285_v32, %v261_v26  ;;  %v2171_v35 = vadd.f32 %v1511_v33, %v261_v26  ;;  %v1287_v36 = vpop.f32.mrb[13].mxu0  ;;  %v1513_v37 = vpop.f32.mrb[13].mxu1 }
 0x197   :  { %v2140_v38 = vadd.f32 %v1287_v36, %v261_v26  ;;  %v2172_v39 = vadd.f32 %v1513_v37, %v261_v26  ;;  %v1289_v40 = vpop.f32.mrb[14].mxu0  ;;  %v1515_v41 = vpop.f32.mrb[14].mxu1  ;;  %1661 = vmatprep.subr.bf16.mxu0 %v1634_v30  ;;  %1702 = vmatprep.subr.bf16.mxu1 %v1636_v31 }
 0x198   :  { %v2141_v42 = vadd.f32 %v1289_v40, %v266_v27  ;;  %v2173_v43 = vadd.f32 %v1515_v41, %v266_v27  ;;  %v1291_v44 = vpop.f32.mrb[15].mxu0  ;;  %v1517_v45 = vpop.f32.mrb[15].mxu1  ;;  %1662 = vmatpush1.bf16.msra.mxu0 %v1633_v28  ;;  %1703 = vmatpush1.bf16.msra.mxu1 %v1635_v29  ;;  %v1584_v48 = vmax.f32 %v2139_v34, 0.0  ;;  %v1586_v49 = vmax.f32 %v2171_v35, 0.0 }
 0x199   :  { %v2142_v46 = vadd.f32 %v1291_v44, %v266_v27  ;;  %v2174_v47 = vadd.f32 %v1517_v45, %v266_v27  ;;  %v1585_v52 = vmax.f32 %v2140_v38, 0.0  ;;  %v1587_v53 = vmax.f32 %v2172_v39, 0.0  ;;  %v281_v30 = vpop.permute.xlu0 %280  ;;  %v286_v31 = vpop.permute.xlu1 %285 }
 0x19a   :  { %v1588_v50 = vmax.f32 %v2141_v42, 0.0  ;;  %v1590_v51 = vmax.f32 %v2173_v43, 0.0 }
 0x19b   :  { %v1589_v54 = vmax.f32 %v2142_v46, 0.0  ;;  %v1591_v55 = vmax.f32 %v2174_v47, 0.0 }
 0x19c   :  { %v1637_v58 = vpack.c.bf16 %v1588_v50, %v1584_v48  ;;  %v1639_v59 = vpack.c.bf16 %v1590_v51, %v1586_v49 }
 0x19d   :  { %v1638_v61 = vpack.c.bf16 %v1589_v54, %v1585_v52  ;;  %v1640_v62 = vpack.c.bf16 %v1591_v55, %v1587_v53  ;;  %v1295_v63 = vpop.f32.mrb[16].mxu0  ;;  %v1521_v0 = vpop.f32.mrb[16].mxu1 }
 0x19e   :  { %v2143_v1 = vadd.f32 %v1295_v63, %v271_v56  ;;  %v2175_v2 = vadd.f32 %v1521_v0, %v271_v56  ;;  %v1297_v3 = vpop.f32.mrb[17].mxu0  ;;  %v1523_v4 = vpop.f32.mrb[17].mxu1 }
 0x19f   :  { %v2144_v5 = vadd.f32 %v1297_v3, %v271_v56  ;;  %v2176_v6 = vadd.f32 %v1523_v4, %v271_v56  ;;  %v1299_v7 = vpop.f32.mrb[18].mxu0  ;;  %v1525_v60 = vpop.f32.mrb[18].mxu1  ;;  %1663 = vmatprep.subr.bf16.mxu0 %v1638_v61  ;;  %1704 = vmatprep.subr.bf16.mxu1 %v1640_v62 }
 0x1a0   :  { %v2145_v8 = vadd.f32 %v1299_v7, %v276_v57  ;;  %v2177_v9 = vadd.f32 %v1525_v60, %v276_v57  ;;  %v1301_v10 = vpop.f32.mrb[19].mxu0  ;;  %v1527_v11 = vpop.f32.mrb[19].mxu1  ;;  %1664 = vmatpush1.bf16.msra.mxu0 %v1637_v58  ;;  %1705 = vmatpush1.bf16.msra.mxu1 %v1639_v59  ;;  %v1592_v14 = vmax.f32 %v2143_v1, 0.0  ;;  %v1594_v17 = vmax.f32 %v2175_v2, 0.0 }
 0x1a1   :  { %v2146_v12 = vadd.f32 %v1301_v10, %v276_v57  ;;  %v2178_v13 = vadd.f32 %v1527_v11, %v276_v57  ;;  %v1593_v26 = vmax.f32 %v2144_v5, 0.0  ;;  %v1595_v27 = vmax.f32 %v2176_v6, 0.0  ;;  %v291_v61 = vpop.permute.xlu0 %290  ;;  %v296_v62 = vpop.permute.xlu1 %295 }
 0x1a2   :  { %v1596_v22 = vmax.f32 %v2145_v8, 0.0  ;;  %v1598_v25 = vmax.f32 %v2177_v9, 0.0 }
 0x1a3   :  { %v1597_v28 = vmax.f32 %v2146_v12, 0.0  ;;  %v1599_v29 = vmax.f32 %v2178_v13, 0.0 }
 0x1a4   :  { %v1641_v32 = vpack.c.bf16 %v1596_v22, %v1592_v14  ;;  %v1643_v33 = vpack.c.bf16 %v1598_v25, %v1594_v17 }
 0x1a5   :  { %v1642_v34 = vpack.c.bf16 %v1597_v28, %v1593_v26  ;;  %v1644_v35 = vpack.c.bf16 %v1599_v29, %v1595_v27  ;;  %v1305_v36 = vpop.f32.mrb[20].mxu0  ;;  %v1531_v37 = vpop.f32.mrb[20].mxu1 }
 0x1a6   :  { %v2147_v38 = vadd.f32 %v1305_v36, %v281_v30  ;;  %v2179_v39 = vadd.f32 %v1531_v37, %v281_v30  ;;  %v1307_v40 = vpop.f32.mrb[21].mxu0  ;;  %v1533_v41 = vpop.f32.mrb[21].mxu1 }
 0x1a7   :  { %v2148_v42 = vadd.f32 %v1307_v40, %v281_v30  ;;  %v2180_v43 = vadd.f32 %v1533_v41, %v281_v30  ;;  %v1309_v44 = vpop.f32.mrb[22].mxu0  ;;  %v1535_v45 = vpop.f32.mrb[22].mxu1  ;;  %1665 = vmatprep.subr.bf16.mxu0 %v1642_v34  ;;  %1706 = vmatprep.subr.bf16.mxu1 %v1644_v35 }
 0x1a8   :  { %v2149_v46 = vadd.f32 %v1309_v44, %v286_v31  ;;  %v2181_v47 = vadd.f32 %v1535_v45, %v286_v31  ;;  %v1311_v48 = vpop.f32.mrb[23].mxu0  ;;  %v1537_v49 = vpop.f32.mrb[23].mxu1  ;;  %1666 = vmatpush1.bf16.msra.mxu0 %v1641_v32  ;;  %1707 = vmatpush1.bf16.msra.mxu1 %v1643_v33  ;;  %v1600_v52 = vmax.f32 %v2147_v38, 0.0  ;;  %v1602_v53 = vmax.f32 %v2179_v39, 0.0 }
 0x1a9   :  { %v2150_v50 = vadd.f32 %v1311_v48, %v286_v31  ;;  %v2182_v51 = vadd.f32 %v1537_v49, %v286_v31  ;;  %v1601_v56 = vmax.f32 %v2148_v42, 0.0  ;;  %v1603_v57 = vmax.f32 %v2180_v43, 0.0  ;;  %v301_v34 = vpop.permute.xlu0 %300  ;;  %v306_v35 = vpop.permute.xlu1 %305 }
 0x1aa   :  { %v1604_v54 = vmax.f32 %v2149_v46, 0.0  ;;  %v1606_v55 = vmax.f32 %v2181_v47, 0.0 }
 0x1ab   :  { %v1605_v58 = vmax.f32 %v2150_v50, 0.0  ;;  %v1607_v59 = vmax.f32 %v2182_v51, 0.0 }
 0x1ac   :  { %v1645_v63 = vpack.c.bf16 %v1604_v54, %v1600_v52  ;;  %v1647_v0 = vpack.c.bf16 %v1606_v55, %v1602_v53 }
 0x1ad   :  { %v1646_v1 = vpack.c.bf16 %v1605_v58, %v1601_v56  ;;  %v1648_v2 = vpack.c.bf16 %v1607_v59, %v1603_v57  ;;  %v1315_v3 = vpop.f32.mrb[24].mxu0  ;;  %v1541_v4 = vpop.f32.mrb[24].mxu1 }
 0x1ae   :  { %v2151_v5 = vadd.f32 %v1315_v3, %v291_v61  ;;  %v2183_v6 = vadd.f32 %v1541_v4, %v291_v61  ;;  %v1317_v7 = vpop.f32.mrb[25].mxu0  ;;  %v1543_v60 = vpop.f32.mrb[25].mxu1 }
 0x1af   :  { %v2152_v8 = vadd.f32 %v1317_v7, %v291_v61  ;;  %v2184_v9 = vadd.f32 %v1543_v60, %v291_v61  ;;  %v1319_v10 = vpop.f32.mrb[26].mxu0  ;;  %v1545_v11 = vpop.f32.mrb[26].mxu1  ;;  %1667 = vmatprep.subr.bf16.mxu0 %v1646_v1  ;;  %1708 = vmatprep.subr.bf16.mxu1 %v1648_v2  ;;  %v2517_v7 = vld [vmem:[#allocation3 + $0xc] ss:$16 sps:$4 sm:$0xff]   ;;  %v2518_v60 = vld [vmem:[#allocation3] ss:$16 sps:$4 sm:$0xff]  }
 0x1b0   :  { %v2153_v12 = vadd.f32 %v1319_v10, %v296_v62  ;;  %v2185_v13 = vadd.f32 %v1545_v11, %v296_v62  ;;  %v1321_v14 = vpop.f32.mrb[27].mxu0  ;;  %v1547_v17 = vpop.f32.mrb[27].mxu1  ;;  %1668 = vmatpush1.bf16.msra.mxu0 %v1645_v63  ;;  %1709 = vmatpush1.bf16.msra.mxu1 %v1647_v0  ;;  %v1608_v26 = vmax.f32 %v2151_v5, 0.0  ;;  %v1610_v27 = vmax.f32 %v2183_v6, 0.0  ;;  %v1624_v5 = vld [vmem:[%s2878_s3] sm:$0x1] }
 0x1b1   :  { %v2154_v22 = vadd.f32 %v1321_v14, %v296_v62  ;;  %v2186_v25 = vadd.f32 %v1547_v17, %v296_v62  ;;  %v1609_v30 = vmax.f32 %v2152_v8, 0.0  ;;  %v1611_v31 = vmax.f32 %v2184_v9, 0.0  ;;  %v2516_v6 = vld [vmem:[#allocation3 + $0x4] ss:$16 sps:$4 sm:$0xff]   ;;  %v2519_v8 = vld [vmem:[#allocation3 + $0x8] ss:$16 sps:$4 sm:$0xff]  }
 0x1b2   :  { %v1612_v28 = vmax.f32 %v2153_v12, 0.0  ;;  %v1614_v29 = vmax.f32 %v2185_v13, 0.0  ;;  %v2520_v9 = vld [vmem:[#allocation3 + $0x24] ss:$16 sps:$4 sm:$0xff]   ;;  %v2521_v10 = vld [vmem:[#allocation3 + $0x2c] ss:$16 sps:$4 sm:$0xff]  }
 0x1b3   :  { %v1613_v32 = vmax.f32 %v2154_v22, 0.0  ;;  %v1615_v33 = vmax.f32 %v2186_v25, 0.0  ;;  %v2522_v11 = vld [vmem:[#allocation3 + $0x20] ss:$16 sps:$4 sm:$0xff]   ;;  %v2523_v12 = vld [vmem:[#allocation3 + $0x28] ss:$16 sps:$4 sm:$0xff]  }
 0x1b4   :  { %v1649_v36 = vpack.c.bf16 %v1612_v28, %v1608_v26  ;;  %v1651_v37 = vpack.c.bf16 %v1614_v29, %v1610_v27  ;;  %v2524_v13 = vld [vmem:[#allocation3 + $0x44] ss:$16 sps:$4 sm:$0xff]   ;;  %v2525_v14 = vld [vmem:[#allocation3 + $0x4c] ss:$16 sps:$4 sm:$0xff]   ;;  %v2526_v17 = vld [vmem:[#allocation3 + $0x40] ss:$16 sps:$4 sm:$0xff]  }
 0x1b5   :  { %v1650_v38 = vpack.c.bf16 %v1613_v32, %v1609_v30  ;;  %v1652_v39 = vpack.c.bf16 %v1615_v33, %v1611_v31  ;;  %v1325_v40 = vpop.f32.mrb[28].mxu0  ;;  %v1551_v41 = vpop.f32.mrb[28].mxu1  ;;  %v2527_v22 = vld [vmem:[#allocation3 + $0x48] ss:$16 sps:$4 sm:$0xff]   ;;  %v2528_v25 = vld [vmem:[#allocation3 + $0x64] ss:$16 sps:$4 sm:$0xff]  }
 0x1b6   :  { %v2155_v42 = vadd.f32 %v1325_v40, %v301_v34  ;;  %v2187_v43 = vadd.f32 %v1551_v41, %v301_v34  ;;  %v1327_v44 = vpop.f32.mrb[29].mxu0  ;;  %v1553_v45 = vpop.f32.mrb[29].mxu1  ;;  %v2529_v26 = vld [vmem:[#allocation3 + $0x6c] ss:$16 sps:$4 sm:$0xff]   ;;  %v2530_v27 = vld [vmem:[#allocation3 + $0x60] ss:$16 sps:$4 sm:$0xff]  }
 0x1b7   :  { %v2156_v46 = vadd.f32 %v1327_v44, %v301_v34  ;;  %v2188_v47 = vadd.f32 %v1553_v45, %v301_v34  ;;  %v1329_v48 = vpop.f32.mrb[30].mxu0  ;;  %v1555_v49 = vpop.f32.mrb[30].mxu1  ;;  %1669 = vmatprep.subr.bf16.mxu0 %v1650_v38  ;;  %1710 = vmatprep.subr.bf16.mxu1 %v1652_v39  ;;  %v2531_v28 = vld [vmem:[#allocation3 + $0x68] ss:$16 sps:$4 sm:$0xff]   ;;  %v2532_v29 = vld [vmem:[#allocation3 + $0x84] ss:$16 sps:$4 sm:$0xff]  }
 0x1b8   :  { %v2157_v50 = vadd.f32 %v1329_v48, %v306_v35  ;;  %v2189_v51 = vadd.f32 %v1555_v49, %v306_v35  ;;  %v1331_v52 = vpop.f32.mrb[31].mxu0  ;;  %v1557_v53 = vpop.f32.mrb[31].mxu1  ;;  %1670 = vmatpush1.bf16.msra.mxu0 %v1649_v36  ;;  %1711 = vmatpush1.bf16.msra.mxu1 %v1651_v37  ;;  %v1616_v56 = vmax.f32 %v2155_v42, 0.0  ;;  %v1618_v57 = vmax.f32 %v2187_v43, 0.0  ;;  %v2533_v30 = vld [vmem:[#allocation3 + $0x8c] ss:$16 sps:$4 sm:$0xff]  }
 0x1b9   :  { %v2158_v54 = vadd.f32 %v1331_v52, %v306_v35  ;;  %v2190_v55 = vadd.f32 %v1557_v53, %v306_v35  ;;  %v1617_v61 = vmax.f32 %v2156_v46, 0.0  ;;  %v1619_v62 = vmax.f32 %v2188_v47, 0.0  ;;  %v2534_v31 = vld [vmem:[#allocation3 + $0x80] ss:$16 sps:$4 sm:$0xff]   ;;  %v2535_v32 = vld [vmem:[#allocation3 + $0x88] ss:$16 sps:$4 sm:$0xff]  }
 0x1ba   :  { %v1620_v58 = vmax.f32 %v2157_v50, 0.0  ;;  %v1622_v59 = vmax.f32 %v2189_v51, 0.0  ;;  %v2536_v33 = vld [vmem:[#allocation3 + $0xa4] ss:$16 sps:$4 sm:$0xff]   ;;  %v2537_v34 = vld [vmem:[#allocation3 + $0xac] ss:$16 sps:$4 sm:$0xff]  }
 0x1bb   :  { %v1621_v63 = vmax.f32 %v2158_v54, 0.0  ;;  %v1623_v0 = vmax.f32 %v2190_v55, 0.0  ;;  %v2538_v35 = vld [vmem:[#allocation3 + $0xa0] ss:$16 sps:$4 sm:$0xff]   ;;  %v2539_v36 = vld [vmem:[#allocation3 + $0xa8] ss:$16 sps:$4 sm:$0xff]  }
 0x1bc   :  { %v1653_v1 = vpack.c.bf16 %v1620_v58, %v1616_v56  ;;  %v1655_v2 = vpack.c.bf16 %v1622_v59, %v1618_v57  ;;  %v2540_v37 = vld [vmem:[#allocation3 + $0xc4] ss:$16 sps:$4 sm:$0xff]   ;;  %v2541_v38 = vld [vmem:[#allocation3 + $0xcc] ss:$16 sps:$4 sm:$0xff]   ;;  %v2542_v39 = vld [vmem:[#allocation3 + $0xc0] ss:$16 sps:$4 sm:$0xff]  }
 0x1bd   :  { %v1654_v3 = vpack.c.bf16 %v1621_v63, %v1617_v61  ;;  %v1656_v4 = vpack.c.bf16 %v1623_v0, %v1619_v62  ;;  %v2543_v40 = vld [vmem:[#allocation3 + $0xc8] ss:$16 sps:$4 sm:$0xff]   ;;  %v2544_v41 = vld [vmem:[#allocation3 + $0xe4] ss:$16 sps:$4 sm:$0xff]   ;;  %v2545_v42 = vld [vmem:[#allocation3 + $0xec] ss:$16 sps:$4 sm:$0xff]  }
 0x1be   :  { %v2546_v43 = vld [vmem:[#allocation3 + $0xe0] ss:$16 sps:$4 sm:$0xff]   ;;  %v2547_v44 = vld [vmem:[#allocation3 + $0xe8] ss:$16 sps:$4 sm:$0xff]   ;;  %v2548_v45 = vld [vmem:[#allocation3 + $0x104] ss:$16 sps:$4 sm:$0xff]  }
 0x1bf   :  { %1671 = vmatprep.subr.bf16.mxu0 %v1654_v3  ;;  %1712 = vmatprep.subr.bf16.mxu1 %v1656_v4  ;;  %v2549_v46 = vld [vmem:[#allocation3 + $0x10c] ss:$16 sps:$4 sm:$0xff]   ;;  %v2550_v47 = vld [vmem:[#allocation3 + $0x100] ss:$16 sps:$4 sm:$0xff]   ;;  %v2551_v48 = vld [vmem:[#allocation3 + $0x108] ss:$16 sps:$4 sm:$0xff]  }
 0x1c0   :  { %1672 = vmatpush1.bf16.msra.mxu0 %v1653_v1  ;;  %1713 = vmatpush1.bf16.msra.mxu1 %v1655_v2  ;;  %v2552_v49 = vld [vmem:[#allocation3 + $0x124] ss:$16 sps:$4 sm:$0xff]   ;;  %v2553_v50 = vld [vmem:[#allocation3 + $0x12c] ss:$16 sps:$4 sm:$0xff]   ;;  %v2554_v51 = vld [vmem:[#allocation3 + $0x120] ss:$16 sps:$4 sm:$0xff]  }
 0x1c1   :  { %1753 = vmatprep.subr.bf16.mxu0 %v2516_v6  ;;  %1835 = vmatprep.subr.bf16.mxu1 %v2517_v7  ;;  %v2555_v52 = vld [vmem:[#allocation3 + $0x128] ss:$16 sps:$4 sm:$0xff]   ;;  %v2556_v53 = vld [vmem:[#allocation3 + $0x144] ss:$16 sps:$4 sm:$0xff]   ;;  %v2557_v54 = vld [vmem:[#allocation3 + $0x14c] ss:$16 sps:$4 sm:$0xff]  }
 0x1c2   :  { %v2558_v55 = vld [vmem:[#allocation3 + $0x140] ss:$16 sps:$4 sm:$0xff]   ;;  %v2559_v56 = vld [vmem:[#allocation3 + $0x148] ss:$16 sps:$4 sm:$0xff]   ;;  %v2560_v57 = vld [vmem:[#allocation3 + $0x164] ss:$16 sps:$4 sm:$0xff]  }
 0x1c3   :  { %1690 = vmatmul.mubr.bf16.vlgmr.msra.gmra.mrb[32].mxu0 %v1624_v5  ;;  %1731 = vmatmul.mubr.bf16.vlgmr.msra.gmra.mrb[32].mxu1 %v1624_v5  ;;  %v2561_v58 = vld [vmem:[#allocation3 + $0x16c] ss:$16 sps:$4 sm:$0xff]   ;;  %v2562_v59 = vld [vmem:[#allocation3 + $0x160] ss:$16 sps:$4 sm:$0xff]   ;;  %v2563_v61 = vld [vmem:[#allocation3 + $0x168] ss:$16 sps:$4 sm:$0xff]  }
 0x1c4   :  { %1754 = vmatpush1.bf16.msra.mxu0 %v2518_v60  ;;  %1836 = vmatpush1.bf16.msra.mxu1 %v2519_v8  ;;  %v2564_v62 = vld [vmem:[#allocation3 + $0x184] ss:$16 sps:$4 sm:$0xff]   ;;  %v2565_v63 = vld [vmem:[#allocation3 + $0x18c] ss:$16 sps:$4 sm:$0xff]   ;;  %v2566_v0 = vld [vmem:[#allocation3 + $0x180] ss:$16 sps:$4 sm:$0xff]  }
 0x1c5   :  { %1755 = vmatprep.subr.bf16.mxu0 %v2520_v9  ;;  %1837 = vmatprep.subr.bf16.mxu1 %v2521_v10  ;;  %v2567_v1 = vld [vmem:[#allocation3 + $0x188] ss:$16 sps:$4 sm:$0xff]   ;;  %v2568_v2 = vld [vmem:[#allocation3 + $0x1a4] ss:$16 sps:$4 sm:$0xff]   ;;  %v2569_v3 = vld [vmem:[#allocation3 + $0x1ac] ss:$16 sps:$4 sm:$0xff]  }
 0x1c6   :  { %v2570_v4 = vld [vmem:[#allocation3 + $0x1a0] ss:$16 sps:$4 sm:$0xff]   ;;  %v2571_v5 = vld [vmem:[#allocation3 + $0x1a8] ss:$16 sps:$4 sm:$0xff]   ;;  %v2572_v6 = vld [vmem:[#allocation3 + $0x1c4] ss:$16 sps:$4 sm:$0xff]  }
 0x1c7   :  { %v2573_v7 = vld [vmem:[#allocation3 + $0x1cc] ss:$16 sps:$4 sm:$0xff]   ;;  %v2574_v60 = vld [vmem:[#allocation3 + $0x1c0] ss:$16 sps:$4 sm:$0xff]   ;;  %v2575_v8 = vld [vmem:[#allocation3 + $0x1c8] ss:$16 sps:$4 sm:$0xff]  }
 0x1c8   :  { %1756 = vmatpush1.bf16.msra.mxu0 %v2522_v11  ;;  %1838 = vmatpush1.bf16.msra.mxu1 %v2523_v12  ;;  %v2576_v9 = vld [vmem:[#allocation3 + $0x1e4] ss:$16 sps:$4 sm:$0xff]   ;;  %v2577_v10 = vld [vmem:[#allocation3 + $0x1ec] ss:$16 sps:$4 sm:$0xff]   ;;  %v2578_v11 = vld [vmem:[#allocation3 + $0x1e0] ss:$16 sps:$4 sm:$0xff]  }
 0x1c9   :  { %1757 = vmatprep.subr.bf16.mxu0 %v2524_v13  ;;  %1839 = vmatprep.subr.bf16.mxu1 %v2525_v14  ;;  %v2579_v12 = vld [vmem:[#allocation3 + $0x1e8] ss:$16 sps:$4 sm:$0xff]   ;;  %v2580_v13 = vld [vmem:[#allocation3 + $0x204] ss:$16 sps:$4 sm:$0xff]   ;;  %v2581_v14 = vld [vmem:[#allocation3 + $0x20c] ss:$16 sps:$4 sm:$0xff]  }
 0x1ca   :  { %s2714_s3 = smov [#allocation8]  }
 0x1cb   :  { %s1957_s23 = sshll.u32 %s2714_s3, 4  ;;  %s1958_s23 = int_to_ptr.vmem [resolvable:$true] %s1957_s23 }
 0x1cc   :  { %1758 = vmatpush1.bf16.msra.mxu0 %v2526_v17  ;;  %1840 = vmatpush1.bf16.msra.mxu1 %v2527_v22  ;;  %s2680_s24 = scalar_lea.vmem %s1958_s23, 64  ;;  %p2685_p3 = scmp.lt.s32.totalorder %s1958_s23, %s1958_s23 }
 0x1cd   :  { %1759 = vmatprep.subr.bf16.mxu0 %v2528_v25  ;;  %1841 = vmatprep.subr.bf16.mxu1 %v2529_v26  ;;  %p2681_p2 = scmp.ne.s32.totalorder %s1958_s23, %s2680_s24  ;;  %p2686_p4 = scmp.lt.s32.totalorder %s2680_s24, %s2680_s24 }
 0x1cf   :  { %p2687_p5 = por %p2686_p4, %p2685_p3 }
 0x1d0   :  { %1760 = vmatpush1.bf16.msra.mxu0 %v2530_v27  ;;  %1842 = vmatpush1.bf16.msra.mxu1 %v2531_v28 }
 0x1d1   :  { %1761 = vmatprep.subr.bf16.mxu0 %v2532_v29  ;;  %1843 = vmatprep.subr.bf16.mxu1 %v2533_v30  ;;  %p2688_p6 = pnand %p2687_p5, %p2681_p2 }
 0x1d4   :  { %1762 = vmatpush1.bf16.msra.mxu0 %v2534_v31  ;;  %1844 = vmatpush1.bf16.msra.mxu1 %v2535_v32 }
 0x1d5   :  { %1763 = vmatprep.subr.bf16.mxu0 %v2536_v33  ;;  %1845 = vmatprep.subr.bf16.mxu1 %v2537_v34  ;;  %v2582_v34 = vld [vmem:[#allocation3 + $0x200] ss:$16 sps:$4 sm:$0xff]  }
 0x1d8   :  { %1764 = vmatpush1.bf16.msra.mxu0 %v2538_v35  ;;  %1846 = vmatpush1.bf16.msra.mxu1 %v2539_v36  ;;  %v2583_v35 = vld [vmem:[#allocation3 + $0x208] ss:$16 sps:$4 sm:$0xff]   ;;  %v2584_v36 = vld [vmem:[#allocation3 + $0x224] ss:$16 sps:$4 sm:$0xff]  }
 0x1d9   :  { %1765 = vmatprep.subr.bf16.mxu0 %v2540_v37  ;;  %1847 = vmatprep.subr.bf16.mxu1 %v2541_v38  ;;  %v2585_v37 = vld [vmem:[#allocation3 + $0x22c] ss:$16 sps:$4 sm:$0xff]   ;;  %v2586_v38 = vld [vmem:[#allocation3 + $0x220] ss:$16 sps:$4 sm:$0xff]  }
 0x1dc   :  { %1766 = vmatpush1.bf16.msra.mxu0 %v2542_v39  ;;  %1848 = vmatpush1.bf16.msra.mxu1 %v2543_v40  ;;  %v2587_v39 = vld [vmem:[#allocation3 + $0x228] ss:$16 sps:$4 sm:$0xff]   ;;  %v2588_v40 = vld [vmem:[#allocation3 + $0x244] ss:$16 sps:$4 sm:$0xff]  }
 0x1dd   :  { %1767 = vmatprep.subr.bf16.mxu0 %v2544_v41  ;;  %1849 = vmatprep.subr.bf16.mxu1 %v2545_v42  ;;  %v2589_v41 = vld [vmem:[#allocation3 + $0x24c] ss:$16 sps:$4 sm:$0xff]   ;;  %v2590_v42 = vld [vmem:[#allocation3 + $0x240] ss:$16 sps:$4 sm:$0xff]  }
 0x1e0   :  { %1768 = vmatpush1.bf16.msra.mxu0 %v2546_v43  ;;  %1850 = vmatpush1.bf16.msra.mxu1 %v2547_v44  ;;  %v2591_v43 = vld [vmem:[#allocation3 + $0x248] ss:$16 sps:$4 sm:$0xff]   ;;  %v2592_v44 = vld [vmem:[#allocation3 + $0x264] ss:$16 sps:$4 sm:$0xff]  }
 0x1e1   :  { %1769 = vmatprep.subr.bf16.mxu0 %v2548_v45  ;;  %1851 = vmatprep.subr.bf16.mxu1 %v2549_v46  ;;  %v2593_v45 = vld [vmem:[#allocation3 + $0x26c] ss:$16 sps:$4 sm:$0xff]   ;;  %v2594_v46 = vld [vmem:[#allocation3 + $0x260] ss:$16 sps:$4 sm:$0xff]  }
 0x1e4   :  { %1770 = vmatpush1.bf16.msra.mxu0 %v2550_v47  ;;  %1852 = vmatpush1.bf16.msra.mxu1 %v2551_v48  ;;  %v2595_v47 = vld [vmem:[#allocation3 + $0x268] ss:$16 sps:$4 sm:$0xff]   ;;  %v2596_v48 = vld [vmem:[#allocation3 + $0x284] ss:$16 sps:$4 sm:$0xff]  }
 0x1e5   :  { %1771 = vmatprep.subr.bf16.mxu0 %v2552_v49  ;;  %1853 = vmatprep.subr.bf16.mxu1 %v2553_v50  ;;  %v2597_v49 = vld [vmem:[#allocation3 + $0x28c] ss:$16 sps:$4 sm:$0xff]   ;;  %v2598_v50 = vld [vmem:[#allocation3 + $0x280] ss:$16 sps:$4 sm:$0xff]  }
 0x1e8   :  { %1772 = vmatpush1.bf16.msra.mxu0 %v2554_v51  ;;  %1854 = vmatpush1.bf16.msra.mxu1 %v2555_v52  ;;  %v2599_v51 = vld [vmem:[#allocation3 + $0x288] ss:$16 sps:$4 sm:$0xff]   ;;  %v2600_v52 = vld [vmem:[#allocation3 + $0x2a4] ss:$16 sps:$4 sm:$0xff]  }
 0x1e9   :  { %1773 = vmatprep.subr.bf16.mxu0 %v2556_v53  ;;  %1855 = vmatprep.subr.bf16.mxu1 %v2557_v54  ;;  %v2601_v53 = vld [vmem:[#allocation3 + $0x2ac] ss:$16 sps:$4 sm:$0xff]   ;;  %v2602_v54 = vld [vmem:[#allocation3 + $0x2a0] ss:$16 sps:$4 sm:$0xff]  }
 0x1ec   :  { %1774 = vmatpush1.bf16.msra.mxu0 %v2558_v55  ;;  %1856 = vmatpush1.bf16.msra.mxu1 %v2559_v56  ;;  %v2603_v55 = vld [vmem:[#allocation3 + $0x2a8] ss:$16 sps:$4 sm:$0xff]   ;;  %v2604_v56 = vld [vmem:[#allocation3 + $0x2c4] ss:$16 sps:$4 sm:$0xff]  }
 0x1ed   :  { %1775 = vmatprep.subr.bf16.mxu0 %v2560_v57  ;;  %1857 = vmatprep.subr.bf16.mxu1 %v2561_v58  ;;  %v2605_v57 = vld [vmem:[#allocation3 + $0x2cc] ss:$16 sps:$4 sm:$0xff]   ;;  %v2606_v58 = vld [vmem:[#allocation3 + $0x2c0] ss:$16 sps:$4 sm:$0xff]  }
 0x1f0   :  { %1776 = vmatpush1.bf16.msra.mxu0 %v2562_v59  ;;  %1858 = vmatpush1.bf16.msra.mxu1 %v2563_v61  ;;  %v2607_v59 = vld [vmem:[#allocation3 + $0x2c8] ss:$16 sps:$4 sm:$0xff]   ;;  %v2608_v61 = vld [vmem:[#allocation3 + $0x2e4] ss:$16 sps:$4 sm:$0xff]  }
 0x1f1   :  { %1777 = vmatprep.subr.bf16.mxu0 %v2564_v62  ;;  %1859 = vmatprep.subr.bf16.mxu1 %v2565_v63  ;;  %v2609_v62 = vld [vmem:[#allocation3 + $0x2ec] ss:$16 sps:$4 sm:$0xff]   ;;  %v2610_v63 = vld [vmem:[#allocation3 + $0x2e0] ss:$16 sps:$4 sm:$0xff]  }
 0x1f4   :  { %1778 = vmatpush1.bf16.msra.mxu0 %v2566_v0  ;;  %1860 = vmatpush1.bf16.msra.mxu1 %v2567_v1  ;;  %v2611_v0 = vld [vmem:[#allocation3 + $0x2e8] ss:$16 sps:$4 sm:$0xff]   ;;  %v2612_v1 = vld [vmem:[#allocation3 + $0x304] ss:$16 sps:$4 sm:$0xff]  }
 0x1f5   :  { %1779 = vmatprep.subr.bf16.mxu0 %v2568_v2  ;;  %1861 = vmatprep.subr.bf16.mxu1 %v2569_v3  ;;  %v2613_v2 = vld [vmem:[#allocation3 + $0x30c] ss:$16 sps:$4 sm:$0xff]   ;;  %v2614_v3 = vld [vmem:[#allocation3 + $0x300] ss:$16 sps:$4 sm:$0xff]  }
 0x1f8   :  { %1780 = vmatpush1.bf16.msra.mxu0 %v2570_v4  ;;  %1862 = vmatpush1.bf16.msra.mxu1 %v2571_v5  ;;  %v2615_v4 = vld [vmem:[#allocation3 + $0x308] ss:$16 sps:$4 sm:$0xff]   ;;  %v2616_v5 = vld [vmem:[#allocation3 + $0x324] ss:$16 sps:$4 sm:$0xff]  }
 0x1f9   :  { %1781 = vmatprep.subr.bf16.mxu0 %v2572_v6  ;;  %1863 = vmatprep.subr.bf16.mxu1 %v2573_v7  ;;  %v2617_v6 = vld [vmem:[#allocation3 + $0x32c] ss:$16 sps:$4 sm:$0xff]   ;;  %v2618_v7 = vld [vmem:[#allocation3 + $0x320] ss:$16 sps:$4 sm:$0xff]  }
 0x1fc   :  { %1782 = vmatpush1.bf16.msra.mxu0 %v2574_v60  ;;  %1864 = vmatpush1.bf16.msra.mxu1 %v2575_v8  ;;  %v2619_v60 = vld [vmem:[#allocation3 + $0x328] ss:$16 sps:$4 sm:$0xff]   ;;  %v2620_v8 = vld [vmem:[#allocation3 + $0x344] ss:$16 sps:$4 sm:$0xff]  }
 0x1fd   :  { %1783 = vmatprep.subr.bf16.mxu0 %v2576_v9  ;;  %1865 = vmatprep.subr.bf16.mxu1 %v2577_v10  ;;  %v2621_v9 = vld [vmem:[#allocation3 + $0x34c] ss:$16 sps:$4 sm:$0xff]   ;;  %v2622_v10 = vld [vmem:[#allocation3 + $0x340] ss:$16 sps:$4 sm:$0xff]  }
 0x200   :  { %1784 = vmatpush1.bf16.msra.mxu0 %v2578_v11  ;;  %1866 = vmatpush1.bf16.msra.mxu1 %v2579_v12  ;;  %v2623_v11 = vld [vmem:[#allocation3 + $0x348] ss:$16 sps:$4 sm:$0xff]   ;;  %v2624_v12 = vld [vmem:[#allocation3 + $0x364] ss:$16 sps:$4 sm:$0xff]  }
 0x201   :  { %1794 = vmatprep.subr.bf16.mxu0 %v2580_v13  ;;  %1876 = vmatprep.subr.bf16.mxu1 %v2581_v14  ;;  %v2625_v13 = vld [vmem:[#allocation3 + $0x36c] ss:$16 sps:$4 sm:$0xff]   ;;  %v2626_v14 = vld [vmem:[#allocation3 + $0x360] ss:$16 sps:$4 sm:$0xff]  }
 0x296   :  { %v1691_v17 = vpop.f32.mrb[32].mxu0  ;;  %v2851_v22 = vpop.f32.mrb[32].mxu1 }
 0x297   :  { %v1693_v25 = vpop.f32.mrb[33].mxu0  ;;  %v1734_v26 = vpop.f32.mrb[33].mxu1  ;;  %v1739_v30 = vpack.c.bf16 %v1691_v17, %v1691_v17  ;;  %v2627_v17 = vld [vmem:[#allocation3 + $0x368] ss:$16 sps:$4 sm:$0xff]  }
 0x298   :  { %v1740_v27 = vpack.c.bf16 %v1693_v25, %v1693_v25  ;;  %v1695_v28 = vpop.f32.mrb[34].mxu0  ;;  %v1736_v29 = vpop.f32.mrb[34].mxu1  ;;  %v1742_v33 = vpack.c.bf16 %v1734_v26, %v1734_v26  ;;  %v2628_v25 = vld [vmem:[#allocation3 + $0x384] ss:$16 sps:$4 sm:$0xff]   ;;  %v2629_v26 = vld [vmem:[#allocation3 + $0x38c] ss:$16 sps:$4 sm:$0xff]  }
 0x299   :  { %v1696_v31 = vpop.f32.mrb[35].mxu0  ;;  %v1737_v32 = vpop.f32.mrb[35].mxu1  ;;  %v2631_v28 = vld [vmem:[#allocation3 + $0x388] ss:$16 sps:$4 sm:$0xff]   ;;  %v2632_v29 = vld [vmem:[#allocation3 + $0x3a4] ss:$16 sps:$4 sm:$0xff]  }
 0x29a   :  { %1785 = vmatprep.mubr.bf16.mxu0 %v1740_v27  ;;  %1867 = vmatprep.mubr.bf16.mxu1 %v1740_v27  ;;  %v2630_v27 = vld [vmem:[#allocation3 + $0x380] ss:$16 sps:$4 sm:$0xff]   ;;  %v2635_v32 = vld [vmem:[#allocation3 + $0x3a8] ss:$16 sps:$4 sm:$0xff]  }
 0x29b   :  { %1786 = vmatmul.mubr.bf16.vlgmr.msra.gmra.mrb[36].mxu0 %v1739_v30  ;;  %1868 = vmatmul.mubr.bf16.vlgmr.msra.gmra.mrb[36].mxu1 %v1739_v30  ;;  %v2633_v30 = vld [vmem:[#allocation3 + $0x3ac] ss:$16 sps:$4 sm:$0xff]   ;;  %v2634_v31 = vld [vmem:[#allocation3 + $0x3a0] ss:$16 sps:$4 sm:$0xff]  }
 0x29c   :  { %1795 = vmatpush1.bf16.msra.mxu0 %v2582_v34  ;;  %1877 = vmatpush1.bf16.msra.mxu1 %v2583_v35 }
 0x29d   :  { %1796 = vmatprep.subr.bf16.mxu0 %v2584_v36  ;;  %1878 = vmatprep.subr.bf16.mxu1 %v2585_v37  ;;  %v1747_v36 = vpop.permute.xlu0 %1746 }
 0x29e   :  { %1826 = vmatprep.mubr.bf16.mxu0 %v1742_v33  ;;  %1908 = vmatprep.mubr.bf16.mxu1 %v1742_v33  ;;  %v1741_v33 = vpack.c.bf16 %v2851_v22, %v2851_v22 }
 0x2a0   :  { %1797 = vmatpush1.bf16.msra.mxu0 %v2586_v38  ;;  %1879 = vmatpush1.bf16.msra.mxu1 %v2587_v39 }
 0x2a1   :  { %1798 = vmatprep.subr.bf16.mxu0 %v2588_v40  ;;  %1880 = vmatprep.subr.bf16.mxu1 %v2589_v41 }
 0x2a4   :  { %1799 = vmatpush1.bf16.msra.mxu0 %v2590_v42  ;;  %1881 = vmatpush1.bf16.msra.mxu1 %v2591_v43 }
 0x2a5   :  { %1800 = vmatprep.subr.bf16.mxu0 %v2592_v44  ;;  %1882 = vmatprep.subr.bf16.mxu1 %v2593_v45 }
 0x2a8   :  { %1801 = vmatpush1.bf16.msra.mxu0 %v2594_v46  ;;  %1883 = vmatpush1.bf16.msra.mxu1 %v2595_v47 }
 0x2a9   :  { %1802 = vmatprep.subr.bf16.mxu0 %v2596_v48  ;;  %1884 = vmatprep.subr.bf16.mxu1 %v2597_v49 }
 0x2ac   :  { %1803 = vmatpush1.bf16.msra.mxu0 %v2598_v50  ;;  %1885 = vmatpush1.bf16.msra.mxu1 %v2599_v51 }
 0x2ad   :  { %1804 = vmatprep.subr.bf16.mxu0 %v2600_v52  ;;  %1886 = vmatprep.subr.bf16.mxu1 %v2601_v53 }
 0x2b0   :  { %1805 = vmatpush1.bf16.msra.mxu0 %v2602_v54  ;;  %1887 = vmatpush1.bf16.msra.mxu1 %v2603_v55 }
 0x2b1   :  { %1806 = vmatprep.subr.bf16.mxu0 %v2604_v56  ;;  %1888 = vmatprep.subr.bf16.mxu1 %v2605_v57 }
 0x2b4   :  { %1807 = vmatpush1.bf16.msra.mxu0 %v2606_v58  ;;  %1889 = vmatpush1.bf16.msra.mxu1 %v2607_v59 }
 0x2b5   :  { %1808 = vmatprep.subr.bf16.mxu0 %v2608_v61  ;;  %1890 = vmatprep.subr.bf16.mxu1 %v2609_v62 }
 0x2b8   :  { %1809 = vmatpush1.bf16.msra.mxu0 %v2610_v63  ;;  %1891 = vmatpush1.bf16.msra.mxu1 %v2611_v0 }
 0x2b9   :  { %1810 = vmatprep.subr.bf16.mxu0 %v2612_v1  ;;  %1892 = vmatprep.subr.bf16.mxu1 %v2613_v2 }
 0x2bc   :  { %1811 = vmatpush1.bf16.msra.mxu0 %v2614_v3  ;;  %1893 = vmatpush1.bf16.msra.mxu1 %v2615_v4 }
 0x2bd   :  { %1812 = vmatprep.subr.bf16.mxu0 %v2616_v5  ;;  %1894 = vmatprep.subr.bf16.mxu1 %v2617_v6 }
 0x2c0   :  { %1813 = vmatpush1.bf16.msra.mxu0 %v2618_v7  ;;  %1895 = vmatpush1.bf16.msra.mxu1 %v2619_v60 }
 0x2c1   :  { %1814 = vmatprep.subr.bf16.mxu0 %v2620_v8  ;;  %1896 = vmatprep.subr.bf16.mxu1 %v2621_v9 }
 0x2c4   :  { %1815 = vmatpush1.bf16.msra.mxu0 %v2622_v10  ;;  %1897 = vmatpush1.bf16.msra.mxu1 %v2623_v11 }
 0x2c5   :  { %1816 = vmatprep.subr.bf16.mxu0 %v2624_v12  ;;  %1898 = vmatprep.subr.bf16.mxu1 %v2625_v13 }
 0x2c8   :  { %1817 = vmatpush1.bf16.msra.mxu0 %v2626_v14  ;;  %1899 = vmatpush1.bf16.msra.mxu1 %v2627_v17 }
 0x2c9   :  { %1818 = vmatprep.subr.bf16.mxu0 %v2628_v25  ;;  %1900 = vmatprep.subr.bf16.mxu1 %v2629_v26 }
 0x2cc   :  { %1819 = vmatpush1.bf16.msra.mxu0 %v2630_v27  ;;  %1901 = vmatpush1.bf16.msra.mxu1 %v2631_v28 }
 0x2cd   :  { %1820 = vmatprep.subr.bf16.mxu0 %v2632_v29  ;;  %1902 = vmatprep.subr.bf16.mxu1 %v2633_v30 }
 0x2d0   :  { %1821 = vmatpush1.bf16.msra.mxu0 %v2634_v31  ;;  %1903 = vmatpush1.bf16.msra.mxu1 %v2635_v32 }
 0x2d1   :  { %1822 = vmatprep.subr.bf16.mxu0 %v2789_v15  ;;  %1904 = vmatprep.subr.bf16.mxu1 %v2791_v16  ;;  %v1749_v15 = vlaneseq  ;;  %v2713_v16 = vmov 1966171168  }
 0x2d2   :  { %v1924_v35 = vunpack.c.l.s4 %v2713_v16 }
 0x2d3   :  { %v1750_v34 = vshrl.u32 %v1749_v15, 7  ;;  %vm1948_vm0 = vcmp.lt.s32.totalorder %v1749_v15, 512 }
 0x2d4   :  { %1823 = vmatpush1.bf16.msra.mxu0 %v2793_v18  ;;  %1905 = vmatpush1.bf16.msra.mxu1 %v2795_v19  ;;  %v1925_v19 = vunpack.c.0.s8 %v1924_v35 }
 0x2d5   :  { %1824 = vmatprep.subr.bf16.mxu0 %v2799_v20  ;;  %1906 = vmatprep.subr.bf16.mxu1 %v2801_v21  ;;  %v1751_v18 = vsub.s32 0, %v1750_v34 }
 0x2d7   :  { %v1752_v37 = vrot.slane %v1747_v36, %v1751_v18 }
 0x2d8   :  { %1825 = vmatpush1.bf16.msra.mxu0 %v2803_v23  ;;  %1907 = vmatpush1.bf16.msra.mxu1 %v2807_v24  ;;  %v1928_v24 = vsub.s32 %v1925_v19, %v1750_v34 }
 0x2db   :  { %1827 = vmatmul.mubr.bf16.vlgmr.msra.gmra.mrb[36].mxu0 %v1741_v33  ;;  %1909 = vmatmul.mubr.bf16.vlgmr.msra.gmra.mrb[36].mxu1 %v1741_v33 }
 0x3ae   :  { %v1828_v20 = vpop.f32.mrb[36].mxu0  ;;  %v1910_v38 = vpop.f32.mrb[36].mxu1 }
 0x3af   :  { %v2191_v21 = vadd.f32 %v1828_v20, %v1752_v37  ;;  %v2193_v39 = vadd.f32 %v1910_v38, %v1752_v37  ;;  %v1830_v23 = vpop.f32.mrb[37].mxu0  ;;  %v1912_v40 = vpop.f32.mrb[37].mxu1 }
 0x3b0   :  { %v2192_v41 = vadd.f32 %v1830_v23, %v1752_v37  ;;  %v2194_v42 = vadd.f32 %v1912_v40, %v1752_v37  ;;  %v1832_v22 = vpop.f32.mrb[38].mxu0  ;;  %v1914_v43 = vpop.f32.mrb[38].mxu1 }
 0x3b1   :  { %v1833_v44 = vpop.f32.mrb[39].mxu0  ;;  %v1915_v45 = vpop.f32.mrb[39].mxu1 }
 0x3b2   :  { %v1921_v46 = vcombine.low %v2191_v21, %v2192_v41  ;;  %v1922_v47 = vcombine.low %v2193_v39, %v2194_v42 }
 0x3b4   :  { %v1929_v48 = vrot.slane %v1921_v46, %v1928_v24  ;;  %v1936_v49 = vrot.slane %v1922_v47, %v1928_v24 }
 0x3b6   :  { %v1937_v50 = vcombine.low %v1929_v48, %v1936_v49 }
 0x3b8   :  { %v1944_v51 = vrot.slane %v1937_v50, %v1928_v24 }
 0x3ba   :  { %1950 = vst.msk [vmem:[#allocation8] sm:$0xf] %vm1948_vm0, %v1944_v51 }
 0x3bb   :  { %2691 = shalt.err (!%p2688_p6)
}
 0x3bc   :  { %s2692_s27 = scalar_lea.hbm %s2880_s5, 64 }
 0x3bd   :  { %p2693_p7 = scmp.ne.s32.totalorder %s2880_s5, %s2692_s27  ;;  %p2696_p8 = scmp.lt.u32.totalorder %s2692_s27, %s2880_s5 }
 0x3bf   :  { %p2698_p9 = pnand %p2696_p8, %p2693_p7 }
 0x3c1   :  { %2701 = shalt.err (!%p2698_p9)
}
 0x3c2   :  { %1960 = dma.vmem_to_hbm [thread:$0]  %s1958_s23, 64, %s2880_s5, [#allocation5]  }
 0x3c3   :  { %2706 = dma.done.wait [#allocation5], 64  }
 0x3c4   :  { %2707 = vsyncadd [#allocation5], 4294967232 }
 0x3c5   :  { %1964 = vsyncpa [#allocation4], 1 }
 0x3c6   :  { %1965 = vsyncpa [#allocation7], 1 }
 0x3c7   :  { %1966 = vsyncpa [#allocation5], 1 }

</bundles_post_ra>
